<compile_context>
chip_gen: v5e
topology: v5e:2x2
jax: 0.10.0
libtpu: 0.0.40
codegen_flags: <defaults>
</compile_context>

<pallas_src>
import functools

import numpy as np
import jax
import jax.numpy as jnp
from jax.experimental import pallas as pl
from jax.experimental.pallas import tpu as pltpu

RPN_MIN_SIZE = 8
RPN_NMS_THRESH = 0.7
RPN_POST_NMS_TOP_N = 2000
RPN_PRE_NMS_TOP_N = 12000


# ----------------------------------------------------------------------------
# Anchor generation (deterministic setup, numpy — same as original repo code)
# ----------------------------------------------------------------------------
def _whctrs(anchor):
    w = anchor[2] - anchor[0] + 1
    h = anchor[3] - anchor[1] + 1
    x_ctr = anchor[0] + 0.5 * (w - 1)
    y_ctr = anchor[1] + 0.5 * (h - 1)
    return w, h, x_ctr, y_ctr


def _mkanchors(ws, hs, x_ctr, y_ctr):
    ws = ws[:, np.newaxis]
    hs = hs[:, np.newaxis]
    return np.hstack((x_ctr - 0.5 * (ws - 1),
                      y_ctr - 0.5 * (hs - 1),
                      x_ctr + 0.5 * (ws - 1),
                      y_ctr + 0.5 * (hs - 1)))


def _ratio_enum(anchor, ratios):
    w, h, x_ctr, y_ctr = _whctrs(anchor)
    size = w * h
    size_ratios = size / ratios
    ws = np.round(np.sqrt(size_ratios))
    hs = np.round(ws * ratios)
    return _mkanchors(ws, hs, x_ctr, y_ctr)


def _scale_enum(anchor, scales):
    w, h, x_ctr, y_ctr = _whctrs(anchor)
    ws = w * scales
    hs = h * scales
    return _mkanchors(ws, hs, x_ctr, y_ctr)


def generate_anchors(base_size=16, ratios=np.array([0.5, 1, 2]),
                     scales=2 ** np.arange(3, 6)):
    base_anchor = np.array([1, 1, base_size, base_size], dtype=np.float64) - 1
    ratio_anchors = _ratio_enum(base_anchor, ratios)
    anchors = np.vstack([_scale_enum(ratio_anchors[i, :], scales)
                         for i in range(ratio_anchors.shape[0])])
    return anchors.astype(np.float32)


# ----------------------------------------------------------------------------
# Tile-size selection
# ----------------------------------------------------------------------------
def _choose_a_tile(A, H, W, B):
    """Largest divisor of A whose (a_tile, 4, H, W) f32 block stays ~<= 1 MiB of VMEM
    (lane/sublane padding included), then split further if needed so the grid has
    >= 2 points (v7x megacore) when B == 1."""
    divisors = [d for d in range(A, 0, -1) if A % d == 0]
    h_pad = -(-H // 8) * 8
    w_pad = -(-W // 128) * 128
    per_anchor_elems = 4 * h_pad * w_pad
    budget_elems = (1 << 20) // 4          # ~1 MiB of f32 per operand block
    a_tile = 1
    for d in divisors:
        if d * per_anchor_elems <= budget_elems:
            a_tile = d
            break
    if B * (A // a_tile) < 2:              # v7x: keep both TensorCores busy
        smaller = [d for d in divisors if d < a_tile]
        if smaller:
            a_tile = smaller[0]
    return a_tile


# ----------------------------------------------------------------------------
# Pallas kernel: fused bbox_transform_inv + clip_boxes
#   im_ref:     (2*B,)                 f32 SMEM   [h0, w0, h1, w1, ...]
#   anch_ref:   (4*A,)                 f32 SMEM   [w, h, cx, cy] per base anchor
#   shifts_ref: (2, H, W)              f32 VMEM   [shift_x, shift_y] planes
#   deltas_ref: (1, a_tile, 4, H, W)   f32/bf16   [dx, dy, dw, dh] per anchor
#   out_ref:    (1, a_tile, 4, H, W)   f32        [x1, y1, x2, y2] (clipped)
# ----------------------------------------------------------------------------
def _proposal_kernel(im_ref, anch_ref, shifts_ref, deltas_ref, out_ref, *, a_tile):
    a0 = pl.program_id(0) * a_tile
    b = pl.program_id(1)

    sx = shifts_ref[0]                     # (H, W)
    sy = shifts_ref[1]

    # Per-image clip bounds, hoisted out of the anchor loop.
    im_h = im_ref[2 * b]
    im_w = im_ref[2 * b + 1]
    hi_x = im_w - 1.0
    hi_y = im_h - 1.0

    # Static unroll over the anchors in this block (a_tile <= A, typically 9).
    for j in range(a_tile):
        aj = a0 + j
        wa = anch_ref[4 * aj + 0]          # scalar anchor width
        ha = anch_ref[4 * aj + 1]          # scalar anchor height
        cx = anch_ref[4 * aj + 2] + sx     # (H, W) anchor center x
        cy = anch_ref[4 * aj + 3] + sy     # (H, W) anchor center y

        dx = deltas_ref[0, j, 0].astype(jnp.float32)
        dy = deltas_ref[0, j, 1].astype(jnp.float32)
        dw = deltas_ref[0, j, 2].astype(jnp.float32)
        dh = deltas_ref[0, j, 3].astype(jnp.float32)

        pred_ctr_x = dx * wa + cx
        pred_ctr_y = dy * ha + cy
        half_w = 0.5 * (jnp.exp(dw) * wa)
        half_h = 0.5 * (jnp.exp(dh) * ha)

        out_ref[0, j, 0] = jnp.clip(pred_ctr_x - half_w, 0.0, hi_x)
        out_ref[0, j, 1] = jnp.clip(pred_ctr_y - half_h, 0.0, hi_y)
        out_ref[0, j, 2] = jnp.clip(pred_ctr_x + half_w, 0.0, hi_x)
        out_ref[0, j, 3] = jnp.clip(pred_ctr_y + half_h, 0.0, hi_y)


# ----------------------------------------------------------------------------
# Jitted wrapper: free NCHW view, pallas_call, return unpadded (B, A, 4, H, W)
# ----------------------------------------------------------------------------
@jax.jit
def _proposal_forward(anchor_geom_flat, shifts, bbox_deltas, im_shapes):
    B, C, H, W = bbox_deltas.shape
    A = anchor_geom_flat.shape[0] // 4
    assert C == 4 * A, "bbox channel count must be 4 * num_anchors"

    # Free metadata reshape of the NCHW tensor — no transpose, no pad, no HBM pass.
    d = bbox_deltas.reshape(B, A, 4, H, W)
    if d.dtype != jnp.bfloat16:            # bf16 passes through (v5e HBM win)
        d = d.astype(jnp.float32)

    im = im_shapes[:, :2].astype(jnp.float32).reshape(-1)   # (2B,) 1-D SMEM

    a_tile = _choose_a_tile(A, H, W, B)
    grid = (A // a_tile, B)                # batch innermost; both axes independent

    kernel = functools.partial(_proposal_kernel, a_tile=a_tile)

    out = pl.pallas_call(
        kernel,
        out_shape=jax.ShapeDtypeStruct((B, A, 4, H, W), jnp.float32),
        grid_spec=pltpu.PrefetchScalarGridSpec(
            num_scalar_prefetch=0,
            grid=grid,
            in_specs=[
                pl.BlockSpec(memory_space=pltpu.MemorySpace.SMEM),   # im_shapes (2B,)
                pl.BlockSpec(memory_space=pltpu.MemorySpace.SMEM),   # anchor geom (4A,)
                pl.BlockSpec((2, H, W), lambda a, b: (0, 0, 0)),     # shift planes (const)
                pl.BlockSpec((1, a_tile, 4, H, W),
                             lambda a, b: (b, a, 0, 0, 0)),          # bbox deltas
            ],
            out_specs=pl.BlockSpec((1, a_tile, 4, H, W),
                                   lambda a, b: (b, a, 0, 0, 0)),
        ),
        compiler_params=pltpu.CompilerParams(
            dimension_semantics=("parallel", "parallel")),
    )(im, anchor_geom_flat, shifts, d)

    # No padding anywhere -> returned as-is (no slice/copy).
    return out


class ProposalLayerPallas:
    """JAX/Pallas equivalent of _ProposalLayer (up to the early `return` in forward).

    Returns clipped proposals in anchor-major layout (B, A, 4, H, W) — i.e. proposal
    ordering (a, h, w) with coordinates (x1, y1, x2, y2) on dim 2.
    `out.transpose(0, 3, 4, 1, 2).reshape(B, H*W*A, 4)` recovers the PyTorch
    (B, K*A, 4) / (h, w, a)-ordered layout.
    """

    def __init__(self, feat_stride, scales, ratios):
        self._feat_stride = feat_stride
        self._anchors = generate_anchors(scales=np.array(scales),
                                         ratios=np.array(ratios))   # (A, 4) f32
        self._num_anchors = self._anchors.shape[0]

        a = self._anchors.astype(np.float32)
        aw = a[:, 2] - a[:, 0] + 1.0
        ah = a[:, 3] - a[:, 1] + 1.0
        acx = a[:, 0] + 0.5 * aw
        acy = a[:, 1] + 0.5 * ah
        # (4A,) flattened [w, h, cx, cy] per anchor for SMEM.
        self._anchor_geom = jnp.asarray(
            np.stack([aw, ah, acx, acy], axis=1).reshape(-1).astype(np.float32))
        self._shift_cache = {}

    def _shifts(self, H, W):
        key = (H, W)
        if key not in self._shift_cache:
            sx = np.broadcast_to((np.arange(W, dtype=np.float32) * self._feat_stride)[None, :], (H, W))
            sy = np.broadcast_to((np.arange(H, dtype=np.float32) * self._feat_stride)[:, None], (H, W))
            self._shift_cache[key] = jnp.asarray(np.stack([sx, sy], axis=0))  # (2, H, W)
        return self._shift_cache[key]

    def __call__(self, rpn_cls_probs, rpn_pred_bboxes, im_shapes, cfg_key=None):
        # `scores` are computed but never used/returned by the reference forward — dropped.
        del rpn_cls_probs, cfg_key
        H, W = rpn_pred_bboxes.shape[2], rpn_pred_bboxes.shape[3]
        shifts = self._shifts(H, W)
        im_shapes = jnp.asarray(im_shapes, dtype=jnp.float32)
        return _proposal_forward(self._anchor_geom, shifts, rpn_pred_bboxes, im_shapes)


# ----------------------------------------------------------------------------
# Pure-JAX reference (bbox_transform_inv + clip_boxes) for correctness check
# ----------------------------------------------------------------------------
def _ref_proposals(anchors_n4, deltas_bn4, im_shapes):
    widths = anchors_n4[:, 2] - anchors_n4[:, 0] + 1.0
    heights = anchors_n4[:, 3] - anchors_n4[:, 1] + 1.0
    ctr_x = anchors_n4[:, 0] + 0.5 * widths
    ctr_y = anchors_n4[:, 1] + 0.5 * heights

    dx, dy, dw, dh = (deltas_bn4[..., 0], deltas_bn4[..., 1],
                      deltas_bn4[..., 2], deltas_bn4[..., 3])
    pcx = dx * widths[None, :] + ctr_x[None, :]
    pcy = dy * heights[None, :] + ctr_y[None, :]
    pw = jnp.exp(dw) * widths[None, :]
    ph = jnp.exp(dh) * heights[None, :]

    x1 = pcx - 0.5 * pw
    y1 = pcy - 0.5 * ph
    x2 = pcx + 0.5 * pw
    y2 = pcy + 0.5 * ph

    im_h = im_shapes[:, 0][:, None]
    im_w = im_shapes[:, 1][:, None]
    x1 = jnp.clip(x1, 0.0, im_w - 1.0)
    y1 = jnp.clip(y1, 0.0, im_h - 1.0)
    x2 = jnp.clip(x2, 0.0, im_w - 1.0)
    y2 = jnp.clip(y2, 0.0, im_h - 1.0)
    return jnp.stack([x1, y1, x2, y2], axis=-1)


if __name__ == "__main__":
    # Small, deterministic example consistent with the module:
    #   feat map 16x16, A = 9 anchors (3 scales x 3 ratios), batch = 2
    B, H, W = 2, 16, 16
    feat_stride = 16
    scales = [8, 16, 32]
    ratios = [0.5, 1, 2]
    A = 9

    key = jax.random.PRNGKey(0)
    k1, k2 = jax.random.split(key)
    rpn_cls_probs = jax.random.uniform(k1, (B, 2 * A, H, W), dtype=jnp.float32)
    rpn_pred_bboxes = 0.5 * jax.random.normal(k2, (B, 4 * A, H, W), dtype=jnp.float32)
    im_shapes = jnp.array([[H * feat_stride, W * feat_stride],
                           [200.0, 240.0]], dtype=jnp.float32)

    layer = ProposalLayerPallas(feat_stride, scales, ratios)
    proposals = layer(rpn_cls_probs, rpn_pred_bboxes, im_shapes)
    proposals = jax.block_until_ready(proposals)
    assert proposals.shape == (B, A, 4, H, W)

    # ---- correctness check against a pure-JAX reference in the PyTorch ordering ----
    shift_x = np.arange(0, W) * feat_stride
    shift_y = np.arange(0, H) * feat_stride
    sx, sy = np.meshgrid(shift_x, shift_y)
    shifts_hw = np.stack([sx.ravel(), sy.ravel(), sx.ravel(), sy.ravel()],
                         axis=1).astype(np.float32)                         # (K, 4)
    anchors_n4 = (layer._anchors[None, :, :] + shifts_hw[:, None, :]).reshape(-1, 4)

    deltas_bn4 = jnp.transpose(rpn_pred_bboxes, (0, 2, 3, 1)).reshape(B, -1, 4)
    ref = _ref_proposals(jnp.asarray(anchors_n4), deltas_bn4, im_shapes)    # (B, N, 4), (h,w,a)

    # kernel output (B, A, 4, H, W) -> PyTorch layout (B, H*W*A, 4)
    got = np.asarray(proposals).transpose(0, 3, 4, 1, 2).reshape(B, -1, 4)

    np.testing.assert_allclose(got, np.asarray(ref), rtol=1e-4, atol=5e-3)
    print("KERNEL_OK")
</pallas_src>

<mosaic_0001>
module attributes {stable_mosaic.version = 11 : i64} {
  func.func @_proposal_kernel(%arg0: i32, %arg1: i32, %arg2: memref<4xf32, #tpu.memory_space<smem>>, %arg3: memref<36xf32, #tpu.memory_space<smem>>, %arg4: memref<2x16x16xf32, #tpu.memory_space<vmem>>, %arg5: memref<1x9x4x16x16xf32, #tpu.memory_space<vmem>>, %arg6: memref<1x9x4x16x16xf32, #tpu.memory_space<vmem>>) attributes {dimension_semantics = [#tpu.dimension_semantics<parallel>, #tpu.dimension_semantics<parallel>], iteration_bounds = array<i64: 1, 2>, scalar_prefetch = 0 : i64, scratch_operands = 0 : i64, tpu.core_type = #tpu.core_type<tc>, window_params = [{transform_indices = @transform_0, window_bounds = array<i64: 4>}, {transform_indices = @transform_1, window_bounds = array<i64: 36>}, {pipeline_mode = #tpu.pipeline_mode<synchronous>, transform_indices = @transform_2, window_bounds = array<i64: 2, 16, 16>}, {transform_indices = @transform_3, window_bounds = array<i64: 1, 9, 4, 16, 16>}, {transform_indices = @transform_4, window_bounds = array<i64: 1, 9, 4, 16, 16>}]} {
    %c9_i32 = arith.constant 9 : i32
    %0 = arith.muli %arg0, %c9_i32 : i32
    %c0 = arith.constant 0 : index
    %c0_0 = arith.constant 0 : index
    %c0_1 = arith.constant 0 : index
    %1 = vector.load %arg4[%c0, %c0_0, %c0_1] : memref<2x16x16xf32, #tpu.memory_space<vmem>>, vector<1x16x16xf32>
    %2 = vector.shape_cast %1 : vector<1x16x16xf32> to vector<16x16xf32>
    %c1 = arith.constant 1 : index
    %c0_2 = arith.constant 0 : index
    %c0_3 = arith.constant 0 : index
    %3 = vector.load %arg4[%c1, %c0_2, %c0_3] : memref<2x16x16xf32, #tpu.memory_space<vmem>>, vector<1x16x16xf32>
    %4 = vector.shape_cast %3 : vector<1x16x16xf32> to vector<16x16xf32>
    %c2_i32 = arith.constant 2 : i32
    %5 = arith.muli %c2_i32, %arg1 : i32
    %6 = arith.index_cast %5 : i32 to index
    %7 = memref.load %arg2[%6] : memref<4xf32, #tpu.memory_space<smem>>
    %c2_i32_4 = arith.constant 2 : i32
    %8 = arith.muli %c2_i32_4, %arg1 : i32
    %c1_i32 = arith.constant 1 : i32
    %9 = arith.addi %8, %c1_i32 : i32
    %10 = arith.index_cast %9 : i32 to index
    %11 = memref.load %arg2[%10] : memref<4xf32, #tpu.memory_space<smem>>
    %cst = arith.constant 1.000000e+00 : f32
    %12 = arith.subf %11, %cst : f32
    %cst_5 = arith.constant 1.000000e+00 : f32
    %13 = arith.subf %7, %cst_5 : f32
    %c0_i32 = arith.constant 0 : i32
    %14 = arith.addi %0, %c0_i32 : i32
    %c4_i32 = arith.constant 4 : i32
    %15 = arith.muli %c4_i32, %14 : i32
    %c0_i32_6 = arith.constant 0 : i32
    %16 = arith.addi %15, %c0_i32_6 : i32
    %17 = arith.index_cast %16 : i32 to index
    %18 = memref.load %arg3[%17] : memref<36xf32, #tpu.memory_space<smem>>
    %c4_i32_7 = arith.constant 4 : i32
    %19 = arith.muli %c4_i32_7, %14 : i32
    %c1_i32_8 = arith.constant 1 : i32
    %20 = arith.addi %19, %c1_i32_8 : i32
    %21 = arith.index_cast %20 : i32 to index
    %22 = memref.load %arg3[%21] : memref<36xf32, #tpu.memory_space<smem>>
    %c4_i32_9 = arith.constant 4 : i32
    %23 = arith.muli %c4_i32_9, %14 : i32
    %c2_i32_10 = arith.constant 2 : i32
    %24 = arith.addi %23, %c2_i32_10 : i32
    %25 = arith.index_cast %24 : i32 to index
    %26 = memref.load %arg3[%25] : memref<36xf32, #tpu.memory_space<smem>>
    %27 = vector.broadcast %26 : f32 to vector<16x16xf32>
    %28 = arith.addf %27, %2 : vector<16x16xf32>
    %c4_i32_11 = arith.constant 4 : i32
    %29 = arith.muli %c4_i32_11, %14 : i32
    %c3_i32 = arith.constant 3 : i32
    %30 = arith.addi %29, %c3_i32 : i32
    %31 = arith.index_cast %30 : i32 to index
    %32 = memref.load %arg3[%31] : memref<36xf32, #tpu.memory_space<smem>>
    %33 = vector.broadcast %32 : f32 to vector<16x16xf32>
    %34 = arith.addf %33, %4 : vector<16x16xf32>
    %c0_12 = arith.constant 0 : index
    %c0_13 = arith.constant 0 : index
    %c0_14 = arith.constant 0 : index
    %c0_15 = arith.constant 0 : index
    %c0_16 = arith.constant 0 : index
    %35 = vector.load %arg5[%c0_12, %c0_13, %c0_14, %c0_15, %c0_16] : memref<1x9x4x16x16xf32, #tpu.memory_space<vmem>>, vector<1x1x1x16x16xf32>
    %36 = vector.shape_cast %35 : vector<1x1x1x16x16xf32> to vector<16x16xf32>
    %c0_17 = arith.constant 0 : index
    %c0_18 = arith.constant 0 : index
    %c1_19 = arith.constant 1 : index
    %c0_20 = arith.constant 0 : index
    %c0_21 = arith.constant 0 : index
    %37 = vector.load %arg5[%c0_17, %c0_18, %c1_19, %c0_20, %c0_21] : memref<1x9x4x16x16xf32, #tpu.memory_space<vmem>>, vector<1x1x1x16x16xf32>
    %38 = vector.shape_cast %37 : vector<1x1x1x16x16xf32> to vector<16x16xf32>
    %c0_22 = arith.constant 0 : index
    %c0_23 = arith.constant 0 : index
    %c2 = arith.constant 2 : index
    %c0_24 = arith.constant 0 : index
    %c0_25 = arith.constant 0 : index
    %39 = vector.load %arg5[%c0_22, %c0_23, %c2, %c0_24, %c0_25] : memref<1x9x4x16x16xf32, #tpu.memory_space<vmem>>, vector<1x1x1x16x16xf32>
    %40 = vector.shape_cast %39 : vector<1x1x1x16x16xf32> to vector<16x16xf32>
    %c0_26 = arith.constant 0 : index
    %c0_27 = arith.constant 0 : index
    %c3 = arith.constant 3 : index
    %c0_28 = arith.constant 0 : index
    %c0_29 = arith.constant 0 : index
    %41 = vector.load %arg5[%c0_26, %c0_27, %c3, %c0_28, %c0_29] : memref<1x9x4x16x16xf32, #tpu.memory_space<vmem>>, vector<1x1x1x16x16xf32>
    %42 = vector.shape_cast %41 : vector<1x1x1x16x16xf32> to vector<16x16xf32>
    %43 = vector.broadcast %18 : f32 to vector<16x16xf32>
    %44 = arith.mulf %36, %43 : vector<16x16xf32>
    %45 = arith.addf %44, %28 : vector<16x16xf32>
    %46 = vector.broadcast %22 : f32 to vector<16x16xf32>
    %47 = arith.mulf %38, %46 : vector<16x16xf32>
    %48 = arith.addf %47, %34 : vector<16x16xf32>
    %49 = math.exp %40 : vector<16x16xf32>
    %50 = vector.broadcast %18 : f32 to vector<16x16xf32>
    %51 = arith.mulf %49, %50 : vector<16x16xf32>
    %cst_30 = arith.constant 5.000000e-01 : f32
    %52 = vector.broadcast %cst_30 : f32 to vector<16x16xf32>
    %53 = arith.mulf %52, %51 : vector<16x16xf32>
    %54 = math.exp %42 : vector<16x16xf32>
    %55 = vector.broadcast %22 : f32 to vector<16x16xf32>
    %56 = arith.mulf %54, %55 : vector<16x16xf32>
    %cst_31 = arith.constant 5.000000e-01 : f32
    %57 = vector.broadcast %cst_31 : f32 to vector<16x16xf32>
    %58 = arith.mulf %57, %56 : vector<16x16xf32>
    %59 = arith.subf %45, %53 : vector<16x16xf32>
    %cst_32 = arith.constant 0.000000e+00 : f32
    %60 = vector.broadcast %cst_32 : f32 to vector<16x16xf32>
    %61 = arith.maximumf %60, %59 : vector<16x16xf32>
    %62 = vector.broadcast %12 : f32 to vector<16x16xf32>
    %63 = arith.minimumf %62, %61 : vector<16x16xf32>
    %c0_33 = arith.constant 0 : index
    %c0_34 = arith.constant 0 : index
    %c0_35 = arith.constant 0 : index
    %c0_36 = arith.constant 0 : index
    %c0_37 = arith.constant 0 : index
    %64 = vector.load %arg6[%c0_33, %c0_34, %c0_35, %c0_36, %c0_37] : memref<1x9x4x16x16xf32, #tpu.memory_space<vmem>>, vector<1x1x1x16x16xf32>
    %65 = vector.shape_cast %64 : vector<1x1x1x16x16xf32> to vector<16x16xf32>
    %66 = vector.shape_cast %63 : vector<16x16xf32> to vector<1x1x1x16x16xf32>
    tpu.vector_store %arg6[%c0_33, %c0_34, %c0_35, %c0_36, %c0_37], %66 {strides = array<i32>} : memref<1x9x4x16x16xf32, #tpu.memory_space<vmem>>, vector<1x1x1x16x16xf32>,
    %67 = arith.subf %48, %58 : vector<16x16xf32>
    %cst_38 = arith.constant 0.000000e+00 : f32
    %68 = vector.broadcast %cst_38 : f32 to vector<16x16xf32>
    %69 = arith.maximumf %68, %67 : vector<16x16xf32>
    %70 = vector.broadcast %13 : f32 to vector<16x16xf32>
    %71 = arith.minimumf %70, %69 : vector<16x16xf32>
    %c0_39 = arith.constant 0 : index
    %c0_40 = arith.constant 0 : index
    %c1_41 = arith.constant 1 : index
    %c0_42 = arith.constant 0 : index
    %c0_43 = arith.constant 0 : index
    %72 = vector.load %arg6[%c0_39, %c0_40, %c1_41, %c0_42, %c0_43] : memref<1x9x4x16x16xf32, #tpu.memory_space<vmem>>, vector<1x1x1x16x16xf32>
    %73 = vector.shape_cast %72 : vector<1x1x1x16x16xf32> to vector<16x16xf32>
    %74 = vector.shape_cast %71 : vector<16x16xf32> to vector<1x1x1x16x16xf32>
    tpu.vector_store %arg6[%c0_39, %c0_40, %c1_41, %c0_42, %c0_43], %74 {strides = array<i32>} : memref<1x9x4x16x16xf32, #tpu.memory_space<vmem>>, vector<1x1x1x16x16xf32>,
    %75 = arith.addf %45, %53 : vector<16x16xf32>
    %cst_44 = arith.constant 0.000000e+00 : f32
    %76 = vector.broadcast %cst_44 : f32 to vector<16x16xf32>
    %77 = arith.maximumf %76, %75 : vector<16x16xf32>
    %78 = vector.broadcast %12 : f32 to vector<16x16xf32>
    %79 = arith.minimumf %78, %77 : vector<16x16xf32>
    %c0_45 = arith.constant 0 : index
    %c0_46 = arith.constant 0 : index
    %c2_47 = arith.constant 2 : index
    %c0_48 = arith.constant 0 : index
    %c0_49 = arith.constant 0 : index
    %80 = vector.load %arg6[%c0_45, %c0_46, %c2_47, %c0_48, %c0_49] : memref<1x9x4x16x16xf32, #tpu.memory_space<vmem>>, vector<1x1x1x16x16xf32>
    %81 = vector.shape_cast %80 : vector<1x1x1x16x16xf32> to vector<16x16xf32>
    %82 = vector.shape_cast %79 : vector<16x16xf32> to vector<1x1x1x16x16xf32>
    tpu.vector_store %arg6[%c0_45, %c0_46, %c2_47, %c0_48, %c0_49], %82 {strides = array<i32>} : memref<1x9x4x16x16xf32, #tpu.memory_space<vmem>>, vector<1x1x1x16x16xf32>,
    %83 = arith.addf %48, %58 : vector<16x16xf32>
    %cst_50 = arith.constant 0.000000e+00 : f32
    %84 = vector.broadcast %cst_50 : f32 to vector<16x16xf32>
    %85 = arith.maximumf %84, %83 : vector<16x16xf32>
    %86 = vector.broadcast %13 : f32 to vector<16x16xf32>
    %87 = arith.minimumf %86, %85 : vector<16x16xf32>
    %c0_51 = arith.constant 0 : index
    %c0_52 = arith.constant 0 : index
    %c3_53 = arith.constant 3 : index
    %c0_54 = arith.constant 0 : index
    %c0_55 = arith.constant 0 : index
    %88 = vector.load %arg6[%c0_51, %c0_52, %c3_53, %c0_54, %c0_55] : memref<1x9x4x16x16xf32, #tpu.memory_space<vmem>>, vector<1x1x1x16x16xf32>
    %89 = vector.shape_cast %88 : vector<1x1x1x16x16xf32> to vector<16x16xf32>
    %90 = vector.shape_cast %87 : vector<16x16xf32> to vector<1x1x1x16x16xf32>
    tpu.vector_store %arg6[%c0_51, %c0_52, %c3_53, %c0_54, %c0_55], %90 {strides = array<i32>} : memref<1x9x4x16x16xf32, #tpu.memory_space<vmem>>, vector<1x1x1x16x16xf32>,
    %c1_i32_56 = arith.constant 1 : i32
    %91 = arith.addi %0, %c1_i32_56 : i32
    %c4_i32_57 = arith.constant 4 : i32
    %92 = arith.muli %c4_i32_57, %91 : i32
    %c0_i32_58 = arith.constant 0 : i32
    %93 = arith.addi %92, %c0_i32_58 : i32
    %94 = arith.index_cast %93 : i32 to index
    %95 = memref.load %arg3[%94] : memref<36xf32, #tpu.memory_space<smem>>
    %c4_i32_59 = arith.constant 4 : i32
    %96 = arith.muli %c4_i32_59, %91 : i32
    %c1_i32_60 = arith.constant 1 : i32
    %97 = arith.addi %96, %c1_i32_60 : i32
    %98 = arith.index_cast %97 : i32 to index
    %99 = memref.load %arg3[%98] : memref<36xf32, #tpu.memory_space<smem>>
    %c4_i32_61 = arith.constant 4 : i32
    %100 = arith.muli %c4_i32_61, %91 : i32
    %c2_i32_62 = arith.constant 2 : i32
    %101 = arith.addi %100, %c2_i32_62 : i32
    %102 = arith.index_cast %101 : i32 to index
    %103 = memref.load %arg3[%102] : memref<36xf32, #tpu.memory_space<smem>>
    %104 = vector.broadcast %103 : f32 to vector<16x16xf32>
    %105 = arith.addf %104, %2 : vector<16x16xf32>
    %c4_i32_63 = arith.constant 4 : i32
    %106 = arith.muli %c4_i32_63, %91 : i32
    %c3_i32_64 = arith.constant 3 : i32
    %107 = arith.addi %106, %c3_i32_64 : i32
    %108 = arith.index_cast %107 : i32 to index
    %109 = memref.load %arg3[%108] : memref<36xf32, #tpu.memory_space<smem>>
    %110 = vector.broadcast %109 : f32 to vector<16x16xf32>
    %111 = arith.addf %110, %4 : vector<16x16xf32>
    %c0_65 = arith.constant 0 : index
    %c1_66 = arith.constant 1 : index
    %c0_67 = arith.constant 0 : index
    %c0_68 = arith.constant 0 : index
    %c0_69 = arith.constant 0 : index
    %112 = vector.load %arg5[%c0_65, %c1_66, %c0_67, %c0_68, %c0_69] : memref<1x9x4x16x16xf32, #tpu.memory_space<vmem>>, vector<1x1x1x16x16xf32>
    %113 = vector.shape_cast %112 : vector<1x1x1x16x16xf32> to vector<16x16xf32>
    %c0_70 = arith.constant 0 : index
    %c1_71 = arith.constant 1 : index
    %c1_72 = arith.constant 1 : index
    %c0_73 = arith.constant 0 : index
    %c0_74 = arith.constant 0 : index
    %114 = vector.load %arg5[%c0_70, %c1_71, %c1_72, %c0_73, %c0_74] : memref<1x9x4x16x16xf32, #tpu.memory_space<vmem>>, vector<1x1x1x16x16xf32>
    %115 = vector.shape_cast %114 : vector<1x1x1x16x16xf32> to vector<16x16xf32>
    %c0_75 = arith.constant 0 : index
    %c1_76 = arith.constant 1 : index
    %c2_77 = arith.constant 2 : index
    %c0_78 = arith.constant 0 : index
    %c0_79 = arith.constant 0 : index
    %116 = vector.load %arg5[%c0_75, %c1_76, %c2_77, %c0_78, %c0_79] : memref<1x9x4x16x16xf32, #tpu.memory_space<vmem>>, vector<1x1x1x16x16xf32>
    %117 = vector.shape_cast %116 : vector<1x1x1x16x16xf32> to vector<16x16xf32>
    %c0_80 = arith.constant 0 : index
    %c1_81 = arith.constant 1 : index
    %c3_82 = arith.constant 3 : index
    %c0_83 = arith.constant 0 : index
    %c0_84 = arith.constant 0 : index
    %118 = vector.load %arg5[%c0_80, %c1_81, %c3_82, %c0_83, %c0_84] : memref<1x9x4x16x16xf32, #tpu.memory_space<vmem>>, vector<1x1x1x16x16xf32>
    %119 = vector.shape_cast %118 : vector<1x1x1x16x16xf32> to vector<16x16xf32>
    %120 = vector.broadcast %95 : f32 to vector<16x16xf32>
    %121 = arith.mulf %113, %120 : vector<16x16xf32>
    %122 = arith.addf %121, %105 : vector<16x16xf32>
    %123 = vector.broadcast %99 : f32 to vector<16x16xf32>
    %124 = arith.mulf %115, %123 : vector<16x16xf32>
    %125 = arith.addf %124, %111 : vector<16x16xf32>
    %126 = math.exp %117 : vector<16x16xf32>
    %127 = vector.broadcast %95 : f32 to vector<16x16xf32>
    %128 = arith.mulf %126, %127 : vector<16x16xf32>
    %cst_85 = arith.constant 5.000000e-01 : f32
    %129 = vector.broadcast %cst_85 : f32 to vector<16x16xf32>
    %130 = arith.mulf %129, %128 : vector<16x16xf32>
    %131 = math.exp %119 : vector<16x16xf32>
    %132 = vector.broadcast %99 : f32 to vector<16x16xf32>
    %133 = arith.mulf %131, %132 : vector<16x16xf32>
    %cst_86 = arith.constant 5.000000e-01 : f32
    %134 = vector.broadcast %cst_86 : f32 to vector<16x16xf32>
    %135 = arith.mulf %134, %133 : vector<16x16xf32>
    %136 = arith.subf %122, %130 : vector<16x16xf32>
    %cst_87 = arith.constant 0.000000e+00 : f32
    %137 = vector.broadcast %cst_87 : f32 to vector<16x16xf32>
    %138 = arith.maximumf %137, %136 : vector<16x16xf32>
    %139 = vector.broadcast %12 : f32 to vector<16x16xf32>
    %140 = arith.minimumf %139, %138 : vector<16x16xf32>
    %c0_88 = arith.constant 0 : index
    %c1_89 = arith.constant 1 : index
    %c0_90 = arith.constant 0 : index
    %c0_91 = arith.constant 0 : index
    %c0_92 = arith.constant 0 : index
    %141 = vector.load %arg6[%c0_88, %c1_89, %c0_90, %c0_91, %c0_92] : memref<1x9x4x16x16xf32, #tpu.memory_space<vmem>>, vector<1x1x1x16x16xf32>
    %142 = vector.shape_cast %141 : vector<1x1x1x16x16xf32> to vector<16x16xf32>
    %143 = vector.shape_cast %140 : vector<16x16xf32> to vector<1x1x1x16x16xf32>
    tpu.vector_store %arg6[%c0_88, %c1_89, %c0_90, %c0_91, %c0_92], %143 {strides = array<i32>} : memref<1x9x4x16x16xf32, #tpu.memory_space<vmem>>, vector<1x1x1x16x16xf32>,
    %144 = arith.subf %125, %135 : vector<16x16xf32>
    %cst_93 = arith.constant 0.000000e+00 : f32
    %145 = vector.broadcast %cst_93 : f32 to vector<16x16xf32>
    %146 = arith.maximumf %145, %144 : vector<16x16xf32>
    %147 = vector.broadcast %13 : f32 to vector<16x16xf32>
    %148 = arith.minimumf %147, %146 : vector<16x16xf32>
    %c0_94 = arith.constant 0 : index
    %c1_95 = arith.constant 1 : index
    %c1_96 = arith.constant 1 : index
    %c0_97 = arith.constant 0 : index
    %c0_98 = arith.constant 0 : index
    %149 = vector.load %arg6[%c0_94, %c1_95, %c1_96, %c0_97, %c0_98] : memref<1x9x4x16x16xf32, #tpu.memory_space<vmem>>, vector<1x1x1x16x16xf32>
    %150 = vector.shape_cast %149 : vector<1x1x1x16x16xf32> to vector<16x16xf32>
    %151 = vector.shape_cast %148 : vector<16x16xf32> to vector<1x1x1x16x16xf32>
    tpu.vector_store %arg6[%c0_94, %c1_95, %c1_96, %c0_97, %c0_98], %151 {strides = array<i32>} : memref<1x9x4x16x16xf32, #tpu.memory_space<vmem>>, vector<1x1x1x16x16xf32>,
    %152 = arith.addf %122, %130 : vector<16x16xf32>
    %cst_99 = arith.constant 0.000000e+00 : f32
    %153 = vector.broadcast %cst_99 : f32 to vector<16x16xf32>
    %154 = arith.maximumf %153, %152 : vector<16x16xf32>
    %155 = vector.broadcast %12 : f32 to vector<16x16xf32>
    %156 = arith.minimumf %155, %154 : vector<16x16xf32>
    %c0_100 = arith.constant 0 : index
    %c1_101 = arith.constant 1 : index
    %c2_102 = arith.constant 2 : index
    %c0_103 = arith.constant 0 : index
    %c0_104 = arith.constant 0 : index
    %157 = vector.load %arg6[%c0_100, %c1_101, %c2_102, %c0_103, %c0_104] : memref<1x9x4x16x16xf32, #tpu.memory_space<vmem>>, vector<1x1x1x16x16xf32>
    %158 = vector.shape_cast %157 : vector<1x1x1x16x16xf32> to vector<16x16xf32>
    %159 = vector.shape_cast %156 : vector<16x16xf32> to vector<1x1x1x16x16xf32>
    tpu.vector_store %arg6[%c0_100, %c1_101, %c2_102, %c0_103, %c0_104], %159 {strides = array<i32>} : memref<1x9x4x16x16xf32, #tpu.memory_space<vmem>>, vector<1x1x1x16x16xf32>,
    %160 = arith.addf %125, %135 : vector<16x16xf32>
    %cst_105 = arith.constant 0.000000e+00 : f32
    %161 = vector.broadcast %cst_105 : f32 to vector<16x16xf32>
    %162 = arith.maximumf %161, %160 : vector<16x16xf32>
    %163 = vector.broadcast %13 : f32 to vector<16x16xf32>
    %164 = arith.minimumf %163, %162 : vector<16x16xf32>
    %c0_106 = arith.constant 0 : index
    %c1_107 = arith.constant 1 : index
    %c3_108 = arith.constant 3 : index
    %c0_109 = arith.constant 0 : index
    %c0_110 = arith.constant 0 : index
    %165 = vector.load %arg6[%c0_106, %c1_107, %c3_108, %c0_109, %c0_110] : memref<1x9x4x16x16xf32, #tpu.memory_space<vmem>>, vector<1x1x1x16x16xf32>
    %166 = vector.shape_cast %165 : vector<1x1x1x16x16xf32> to vector<16x16xf32>
    %167 = vector.shape_cast %164 : vector<16x16xf32> to vector<1x1x1x16x16xf32>
    tpu.vector_store %arg6[%c0_106, %c1_107, %c3_108, %c0_109, %c0_110], %167 {strides = array<i32>} : memref<1x9x4x16x16xf32, #tpu.memory_space<vmem>>, vector<1x1x1x16x16xf32>,
    %c2_i32_111 = arith.constant 2 : i32
    %168 = arith.addi %0, %c2_i32_111 : i32
    %c4_i32_112 = arith.constant 4 : i32
    %169 = arith.muli %c4_i32_112, %168 : i32
    %c0_i32_113 = arith.constant 0 : i32
    %170 = arith.addi %169, %c0_i32_113 : i32
    %171 = arith.index_cast %170 : i32 to index
    %172 = memref.load %arg3[%171] : memref<36xf32, #tpu.memory_space<smem>>
    %c4_i32_114 = arith.constant 4 : i32
    %173 = arith.muli %c4_i32_114, %168 : i32
    %c1_i32_115 = arith.constant 1 : i32
    %174 = arith.addi %173, %c1_i32_115 : i32
    %175 = arith.index_cast %174 : i32 to index
    %176 = memref.load %arg3[%175] : memref<36xf32, #tpu.memory_space<smem>>
    %c4_i32_116 = arith.constant 4 : i32
    %177 = arith.muli %c4_i32_116, %168 : i32
    %c2_i32_117 = arith.constant 2 : i32
    %178 = arith.addi %177, %c2_i32_117 : i32
    %179 = arith.index_cast %178 : i32 to index
    %180 = memref.load %arg3[%179] : memref<36xf32, #tpu.memory_space<smem>>
    %181 = vector.broadcast %180 : f32 to vector<16x16xf32>
    %182 = arith.addf %181, %2 : vector<16x16xf32>
    %c4_i32_118 = arith.constant 4 : i32
    %183 = arith.muli %c4_i32_118, %168 : i32
    %c3_i32_119 = arith.constant 3 : i32
    %184 = arith.addi %183, %c3_i32_119 : i32
    %185 = arith.index_cast %184 : i32 to index
    %186 = memref.load %arg3[%185] : memref<36xf32, #tpu.memory_space<smem>>
    %187 = vector.broadcast %186 : f32 to vector<16x16xf32>
    %188 = arith.addf %187, %4 : vector<16x16xf32>
    %c0_120 = arith.constant 0 : index
    %c2_121 = arith.constant 2 : index
    %c0_122 = arith.constant 0 : index
    %c0_123 = arith.constant 0 : index
    %c0_124 = arith.constant 0 : index
    %189 = vector.load %arg5[%c0_120, %c2_121, %c0_122, %c0_123, %c0_124] : memref<1x9x4x16x16xf32, #tpu.memory_space<vmem>>, vector<1x1x1x16x16xf32>
    %190 = vector.shape_cast %189 : vector<1x1x1x16x16xf32> to vector<16x16xf32>
    %c0_125 = arith.constant 0 : index
    %c2_126 = arith.constant 2 : index
    %c1_127 = arith.constant 1 : index
    %c0_128 = arith.constant 0 : index
    %c0_129 = arith.constant 0 : index
    %191 = vector.load %arg5[%c0_125, %c2_126, %c1_127, %c0_128, %c0_129] : memref<1x9x4x16x16xf32, #tpu.memory_space<vmem>>, vector<1x1x1x16x16xf32>
    %192 = vector.shape_cast %191 : vector<1x1x1x16x16xf32> to vector<16x16xf32>
    %c0_130 = arith.constant 0 : index
    %c2_131 = arith.constant 2 : index
    %c2_132 = arith.constant 2 : index
    %c0_133 = arith.constant 0 : index
    %c0_134 = arith.constant 0 : index
    %193 = vector.load %arg5[%c0_130, %c2_131, %c2_132, %c0_133, %c0_134] : memref<1x9x4x16x16xf32, #tpu.memory_space<vmem>>, vector<1x1x1x16x16xf32>
    %194 = vector.shape_cast %193 : vector<1x1x1x16x16xf32> to vector<16x16xf32>
    %c0_135 = arith.constant 0 : index
    %c2_136 = arith.constant 2 : index
    %c3_137 = arith.constant 3 : index
    %c0_138 = arith.constant 0 : index
    %c0_139 = arith.constant 0 : index
    %195 = vector.load %arg5[%c0_135, %c2_136, %c3_137, %c0_138, %c0_139] : memref<1x9x4x16x16xf32, #tpu.memory_space<vmem>>, vector<1x1x1x16x16xf32>
    %196 = vector.shape_cast %195 : vector<1x1x1x16x16xf32> to vector<16x16xf32>
    %197 = vector.broadcast %172 : f32 to vector<16x16xf32>
    %198 = arith.mulf %190, %197 : vector<16x16xf32>
    %199 = arith.addf %198, %182 : vector<16x16xf32>
    %200 = vector.broadcast %176 : f32 to vector<16x16xf32>
    %201 = arith.mulf %192, %200 : vector<16x16xf32>
    %202 = arith.addf %201, %188 : vector<16x16xf32>
    %203 = math.exp %194 : vector<16x16xf32>
    %204 = vector.broadcast %172 : f32 to vector<16x16xf32>
    %205 = arith.mulf %203, %204 : vector<16x16xf32>
    %cst_140 = arith.constant 5.000000e-01 : f32
    %206 = vector.broadcast %cst_140 : f32 to vector<16x16xf32>
    %207 = arith.mulf %206, %205 : vector<16x16xf32>
    %208 = math.exp %196 : vector<16x16xf32>
    %209 = vector.broadcast %176 : f32 to vector<16x16xf32>
    %210 = arith.mulf %208, %209 : vector<16x16xf32>
    %cst_141 = arith.constant 5.000000e-01 : f32
    %211 = vector.broadcast %cst_141 : f32 to vector<16x16xf32>
    %212 = arith.mulf %211, %210 : vector<16x16xf32>
    %213 = arith.subf %199, %207 : vector<16x16xf32>
    %cst_142 = arith.constant 0.000000e+00 : f32
    %214 = vector.broadcast %cst_142 : f32 to vector<16x16xf32>
    %215 = arith.maximumf %214, %213 : vector<16x16xf32>
    %216 = vector.broadcast %12 : f32 to vector<16x16xf32>
    %217 = arith.minimumf %216, %215 : vector<16x16xf32>
    %c0_143 = arith.constant 0 : index
    %c2_144 = arith.constant 2 : index
    %c0_145 = arith.constant 0 : index
    %c0_146 = arith.constant 0 : index
    %c0_147 = arith.constant 0 : index
    %218 = vector.load %arg6[%c0_143, %c2_144, %c0_145, %c0_146, %c0_147] : memref<1x9x4x16x16xf32, #tpu.memory_space<vmem>>, vector<1x1x1x16x16xf32>
    %219 = vector.shape_cast %218 : vector<1x1x1x16x16xf32> to vector<16x16xf32>
    %220 = vector.shape_cast %217 : vector<16x16xf32> to vector<1x1x1x16x16xf32>
    tpu.vector_store %arg6[%c0_143, %c2_144, %c0_145, %c0_146, %c0_147], %220 {strides = array<i32>} : memref<1x9x4x16x16xf32, #tpu.memory_space<vmem>>, vector<1x1x1x16x16xf32>,
    %221 = arith.subf %202, %212 : vector<16x16xf32>
    %cst_148 = arith.constant 0.000000e+00 : f32
    %222 = vector.broadcast %cst_148 : f32 to vector<16x16xf32>
    %223 = arith.maximumf %222, %221 : vector<16x16xf32>
    %224 = vector.broadcast %13 : f32 to vector<16x16xf32>
    %225 = arith.minimumf %224, %223 : vector<16x16xf32>
    %c0_149 = arith.constant 0 : index
    %c2_150 = arith.constant 2 : index
    %c1_151 = arith.constant 1 : index
    %c0_152 = arith.constant 0 : index
    %c0_153 = arith.constant 0 : index
    %226 = vector.load %arg6[%c0_149, %c2_150, %c1_151, %c0_152, %c0_153] : memref<1x9x4x16x16xf32, #tpu.memory_space<vmem>>, vector<1x1x1x16x16xf32>
    %227 = vector.shape_cast %226 : vector<1x1x1x16x16xf32> to vector<16x16xf32>
    %228 = vector.shape_cast %225 : vector<16x16xf32> to vector<1x1x1x16x16xf32>
    tpu.vector_store %arg6[%c0_149, %c2_150, %c1_151, %c0_152, %c0_153], %228 {strides = array<i32>} : memref<1x9x4x16x16xf32, #tpu.memory_space<vmem>>, vector<1x1x1x16x16xf32>,
    %229 = arith.addf %199, %207 : vector<16x16xf32>
    %cst_154 = arith.constant 0.000000e+00 : f32
    %230 = vector.broadcast %cst_154 : f32 to vector<16x16xf32>
    %231 = arith.maximumf %230, %229 : vector<16x16xf32>
    %232 = vector.broadcast %12 : f32 to vector<16x16xf32>
    %233 = arith.minimumf %232, %231 : vector<16x16xf32>
    %c0_155 = arith.constant 0 : index
    %c2_156 = arith.constant 2 : index
    %c2_157 = arith.constant 2 : index
    %c0_158 = arith.constant 0 : index
    %c0_159 = arith.constant 0 : index
    %234 = vector.load %arg6[%c0_155, %c2_156, %c2_157, %c0_158, %c0_159] : memref<1x9x4x16x16xf32, #tpu.memory_space<vmem>>, vector<1x1x1x16x16xf32>
    %235 = vector.shape_cast %234 : vector<1x1x1x16x16xf32> to vector<16x16xf32>
    %236 = vector.shape_cast %233 : vector<16x16xf32> to vector<1x1x1x16x16xf32>
    tpu.vector_store %arg6[%c0_155, %c2_156, %c2_157, %c0_158, %c0_159], %236 {strides = array<i32>} : memref<1x9x4x16x16xf32, #tpu.memory_space<vmem>>, vector<1x1x1x16x16xf32>,
    %237 = arith.addf %202, %212 : vector<16x16xf32>
    %cst_160 = arith.constant 0.000000e+00 : f32
    %238 = vector.broadcast %cst_160 : f32 to vector<16x16xf32>
    %239 = arith.maximumf %238, %237 : vector<16x16xf32>
    %240 = vector.broadcast %13 : f32 to vector<16x16xf32>
    %241 = arith.minimumf %240, %239 : vector<16x16xf32>
    %c0_161 = arith.constant 0 : index
    %c2_162 = arith.constant 2 : index
    %c3_163 = arith.constant 3 : index
    %c0_164 = arith.constant 0 : index
    %c0_165 = arith.constant 0 : index
    %242 = vector.load %arg6[%c0_161, %c2_162, %c3_163, %c0_164, %c0_165] : memref<1x9x4x16x16xf32, #tpu.memory_space<vmem>>, vector<1x1x1x16x16xf32>
    %243 = vector.shape_cast %242 : vector<1x1x1x16x16xf32> to vector<16x16xf32>
    %244 = vector.shape_cast %241 : vector<16x16xf32> to vector<1x1x1x16x16xf32>
    tpu.vector_store %arg6[%c0_161, %c2_162, %c3_163, %c0_164, %c0_165], %244 {strides = array<i32>} : memref<1x9x4x16x16xf32, #tpu.memory_space<vmem>>, vector<1x1x1x16x16xf32>,
    %c3_i32_166 = arith.constant 3 : i32
    %245 = arith.addi %0, %c3_i32_166 : i32
    %c4_i32_167 = arith.constant 4 : i32
    %246 = arith.muli %c4_i32_167, %245 : i32
    %c0_i32_168 = arith.constant 0 : i32
    %247 = arith.addi %246, %c0_i32_168 : i32
    %248 = arith.index_cast %247 : i32 to index
    %249 = memref.load %arg3[%248] : memref<36xf32, #tpu.memory_space<smem>>
    %c4_i32_169 = arith.constant 4 : i32
    %250 = arith.muli %c4_i32_169, %245 : i32
    %c1_i32_170 = arith.constant 1 : i32
    %251 = arith.addi %250, %c1_i32_170 : i32
    %252 = arith.index_cast %251 : i32 to index
    %253 = memref.load %arg3[%252] : memref<36xf32, #tpu.memory_space<smem>>
    %c4_i32_171 = arith.constant 4 : i32
    %254 = arith.muli %c4_i32_171, %245 : i32
    %c2_i32_172 = arith.constant 2 : i32
    %255 = arith.addi %254, %c2_i32_172 : i32
    %256 = arith.index_cast %255 : i32 to index
    %257 = memref.load %arg3[%256] : memref<36xf32, #tpu.memory_space<smem>>
    %258 = vector.broadcast %257 : f32 to vector<16x16xf32>
    %259 = arith.addf %258, %2 : vector<16x16xf32>
    %c4_i32_173 = arith.constant 4 : i32
    %260 = arith.muli %c4_i32_173, %245 : i32
    %c3_i32_174 = arith.constant 3 : i32
    %261 = arith.addi %260, %c3_i32_174 : i32
    %262 = arith.index_cast %261 : i32 to index
    %263 = memref.load %arg3[%262] : memref<36xf32, #tpu.memory_space<smem>>
    %264 = vector.broadcast %263 : f32 to vector<16x16xf32>
    %265 = arith.addf %264, %4 : vector<16x16xf32>
    %c0_175 = arith.constant 0 : index
    %c3_176 = arith.constant 3 : index
    %c0_177 = arith.constant 0 : index
    %c0_178 = arith.constant 0 : index
    %c0_179 = arith.constant 0 : index
    %266 = vector.load %arg5[%c0_175, %c3_176, %c0_177, %c0_178, %c0_179] : memref<1x9x4x16x16xf32, #tpu.memory_space<vmem>>, vector<1x1x1x16x16xf32>
    %267 = vector.shape_cast %266 : vector<1x1x1x16x16xf32> to vector<16x16xf32>
    %c0_180 = arith.constant 0 : index
    %c3_181 = arith.constant 3 : index
    %c1_182 = arith.constant 1 : index
    %c0_183 = arith.constant 0 : index
    %c0_184 = arith.constant 0 : index
    %268 = vector.load %arg5[%c0_180, %c3_181, %c1_182, %c0_183, %c0_184] : memref<1x9x4x16x16xf32, #tpu.memory_space<vmem>>, vector<1x1x1x16x16xf32>
    %269 = vector.shape_cast %268 : vector<1x1x1x16x16xf32> to vector<16x16xf32>
    %c0_185 = arith.constant 0 : index
    %c3_186 = arith.constant 3 : index
    %c2_187 = arith.constant 2 : index
    %c0_188 = arith.constant 0 : index
    %c0_189 = arith.constant 0 : index
    %270 = vector.load %arg5[%c0_185, %c3_186, %c2_187, %c0_188, %c0_189] : memref<1x9x4x16x16xf32, #tpu.memory_space<vmem>>, vector<1x1x1x16x16xf32>
    %271 = vector.shape_cast %270 : vector<1x1x1x16x16xf32> to vector<16x16xf32>
    %c0_190 = arith.constant 0 : index
    %c3_191 = arith.constant 3 : index
    %c3_192 = arith.constant 3 : index
    %c0_193 = arith.constant 0 : index
    %c0_194 = arith.constant 0 : index
    %272 = vector.load %arg5[%c0_190, %c3_191, %c3_192, %c0_193, %c0_194] : memref<1x9x4x16x16xf32, #tpu.memory_space<vmem>>, vector<1x1x1x16x16xf32>
    %273 = vector.shape_cast %272 : vector<1x1x1x16x16xf32> to vector<16x16xf32>
    %274 = vector.broadcast %249 : f32 to vector<16x16xf32>
    %275 = arith.mulf %267, %274 : vector<16x16xf32>
    %276 = arith.addf %275, %259 : vector<16x16xf32>
    %277 = vector.broadcast %253 : f32 to vector<16x16xf32>
    %278 = arith.mulf %269, %277 : vector<16x16xf32>
    %279 = arith.addf %278, %265 : vector<16x16xf32>
    %280 = math.exp %271 : vector<16x16xf32>
    %281 = vector.broadcast %249 : f32 to vector<16x16xf32>
    %282 = arith.mulf %280, %281 : vector<16x16xf32>
    %cst_195 = arith.constant 5.000000e-01 : f32
    %283 = vector.broadcast %cst_195 : f32 to vector<16x16xf32>
    %284 = arith.mulf %283, %282 : vector<16x16xf32>
    %285 = math.exp %273 : vector<16x16xf32>
    %286 = vector.broadcast %253 : f32 to vector<16x16xf32>
    %287 = arith.mulf %285, %286 : vector<16x16xf32>
    %cst_196 = arith.constant 5.000000e-01 : f32
    %288 = vector.broadcast %cst_196 : f32 to vector<16x16xf32>
    %289 = arith.mulf %288, %287 : vector<16x16xf32>
    %290 = arith.subf %276, %284 : vector<16x16xf32>
    %cst_197 = arith.constant 0.000000e+00 : f32
    %291 = vector.broadcast %cst_197 : f32 to vector<16x16xf32>
    %292 = arith.maximumf %291, %290 : vector<16x16xf32>
    %293 = vector.broadcast %12 : f32 to vector<16x16xf32>
    %294 = arith.minimumf %293, %292 : vector<16x16xf32>
    %c0_198 = arith.constant 0 : index
    %c3_199 = arith.constant 3 : index
    %c0_200 = arith.constant 0 : index
    %c0_201 = arith.constant 0 : index
    %c0_202 = arith.constant 0 : index
    %295 = vector.load %arg6[%c0_198, %c3_199, %c0_200, %c0_201, %c0_202] : memref<1x9x4x16x16xf32, #tpu.memory_space<vmem>>, vector<1x1x1x16x16xf32>
    %296 = vector.shape_cast %295 : vector<1x1x1x16x16xf32> to vector<16x16xf32>
    %297 = vector.shape_cast %294 : vector<16x16xf32> to vector<1x1x1x16x16xf32>
    tpu.vector_store %arg6[%c0_198, %c3_199, %c0_200, %c0_201, %c0_202], %297 {strides = array<i32>} : memref<1x9x4x16x16xf32, #tpu.memory_space<vmem>>, vector<1x1x1x16x16xf32>,
    %298 = arith.subf %279, %289 : vector<16x16xf32>
    %cst_203 = arith.constant 0.000000e+00 : f32
    %299 = vector.broadcast %cst_203 : f32 to vector<16x16xf32>
    %300 = arith.maximumf %299, %298 : vector<16x16xf32>
    %301 = vector.broadcast %13 : f32 to vector<16x16xf32>
    %302 = arith.minimumf %301, %300 : vector<16x16xf32>
    %c0_204 = arith.constant 0 : index
    %c3_205 = arith.constant 3 : index
    %c1_206 = arith.constant 1 : index
    %c0_207 = arith.constant 0 : index
    %c0_208 = arith.constant 0 : index
    %303 = vector.load %arg6[%c0_204, %c3_205, %c1_206, %c0_207, %c0_208] : memref<1x9x4x16x16xf32, #tpu.memory_space<vmem>>, vector<1x1x1x16x16xf32>
    %304 = vector.shape_cast %303 : vector<1x1x1x16x16xf32> to vector<16x16xf32>
    %305 = vector.shape_cast %302 : vector<16x16xf32> to vector<1x1x1x16x16xf32>
    tpu.vector_store %arg6[%c0_204, %c3_205, %c1_206, %c0_207, %c0_208], %305 {strides = array<i32>} : memref<1x9x4x16x16xf32, #tpu.memory_space<vmem>>, vector<1x1x1x16x16xf32>,
    %306 = arith.addf %276, %284 : vector<16x16xf32>
    %cst_209 = arith.constant 0.000000e+00 : f32
    %307 = vector.broadcast %cst_209 : f32 to vector<16x16xf32>
    %308 = arith.maximumf %307, %306 : vector<16x16xf32>
    %309 = vector.broadcast %12 : f32 to vector<16x16xf32>
    %310 = arith.minimumf %309, %308 : vector<16x16xf32>
    %c0_210 = arith.constant 0 : index
    %c3_211 = arith.constant 3 : index
    %c2_212 = arith.constant 2 : index
    %c0_213 = arith.constant 0 : index
    %c0_214 = arith.constant 0 : index
    %311 = vector.load %arg6[%c0_210, %c3_211, %c2_212, %c0_213, %c0_214] : memref<1x9x4x16x16xf32, #tpu.memory_space<vmem>>, vector<1x1x1x16x16xf32>
    %312 = vector.shape_cast %311 : vector<1x1x1x16x16xf32> to vector<16x16xf32>
    %313 = vector.shape_cast %310 : vector<16x16xf32> to vector<1x1x1x16x16xf32>
    tpu.vector_store %arg6[%c0_210, %c3_211, %c2_212, %c0_213, %c0_214], %313 {strides = array<i32>} : memref<1x9x4x16x16xf32, #tpu.memory_space<vmem>>, vector<1x1x1x16x16xf32>,
    %314 = arith.addf %279, %289 : vector<16x16xf32>
    %cst_215 = arith.constant 0.000000e+00 : f32
    %315 = vector.broadcast %cst_215 : f32 to vector<16x16xf32>
    %316 = arith.maximumf %315, %314 : vector<16x16xf32>
    %317 = vector.broadcast %13 : f32 to vector<16x16xf32>
    %318 = arith.minimumf %317, %316 : vector<16x16xf32>
    %c0_216 = arith.constant 0 : index
    %c3_217 = arith.constant 3 : index
    %c3_218 = arith.constant 3 : index
    %c0_219 = arith.constant 0 : index
    %c0_220 = arith.constant 0 : index
    %319 = vector.load %arg6[%c0_216, %c3_217, %c3_218, %c0_219, %c0_220] : memref<1x9x4x16x16xf32, #tpu.memory_space<vmem>>, vector<1x1x1x16x16xf32>
    %320 = vector.shape_cast %319 : vector<1x1x1x16x16xf32> to vector<16x16xf32>
    %321 = vector.shape_cast %318 : vector<16x16xf32> to vector<1x1x1x16x16xf32>
    tpu.vector_store %arg6[%c0_216, %c3_217, %c3_218, %c0_219, %c0_220], %321 {strides = array<i32>} : memref<1x9x4x16x16xf32, #tpu.memory_space<vmem>>, vector<1x1x1x16x16xf32>,
    %c4_i32_221 = arith.constant 4 : i32
    %322 = arith.addi %0, %c4_i32_221 : i32
    %c4_i32_222 = arith.constant 4 : i32
    %323 = arith.muli %c4_i32_222, %322 : i32
    %c0_i32_223 = arith.constant 0 : i32
    %324 = arith.addi %323, %c0_i32_223 : i32
    %325 = arith.index_cast %324 : i32 to index
    %326 = memref.load %arg3[%325] : memref<36xf32, #tpu.memory_space<smem>>
    %c4_i32_224 = arith.constant 4 : i32
    %327 = arith.muli %c4_i32_224, %322 : i32
    %c1_i32_225 = arith.constant 1 : i32
    %328 = arith.addi %327, %c1_i32_225 : i32
    %329 = arith.index_cast %328 : i32 to index
    %330 = memref.load %arg3[%329] : memref<36xf32, #tpu.memory_space<smem>>
    %c4_i32_226 = arith.constant 4 : i32
    %331 = arith.muli %c4_i32_226, %322 : i32
    %c2_i32_227 = arith.constant 2 : i32
    %332 = arith.addi %331, %c2_i32_227 : i32
    %333 = arith.index_cast %332 : i32 to index
    %334 = memref.load %arg3[%333] : memref<36xf32, #tpu.memory_space<smem>>
    %335 = vector.broadcast %334 : f32 to vector<16x16xf32>
    %336 = arith.addf %335, %2 : vector<16x16xf32>
    %c4_i32_228 = arith.constant 4 : i32
    %337 = arith.muli %c4_i32_228, %322 : i32
    %c3_i32_229 = arith.constant 3 : i32
    %338 = arith.addi %337, %c3_i32_229 : i32
    %339 = arith.index_cast %338 : i32 to index
    %340 = memref.load %arg3[%339] : memref<36xf32, #tpu.memory_space<smem>>
    %341 = vector.broadcast %340 : f32 to vector<16x16xf32>
    %342 = arith.addf %341, %4 : vector<16x16xf32>
    %c0_230 = arith.constant 0 : index
    %c4 = arith.constant 4 : index
    %c0_231 = arith.constant 0 : index
    %c0_232 = arith.constant 0 : index
    %c0_233 = arith.constant 0 : index
    %343 = vector.load %arg5[%c0_230, %c4, %c0_231, %c0_232, %c0_233] : memref<1x9x4x16x16xf32, #tpu.memory_space<vmem>>, vector<1x1x1x16x16xf32>
    %344 = vector.shape_cast %343 : vector<1x1x1x16x16xf32> to vector<16x16xf32>
    %c0_234 = arith.constant 0 : index
    %c4_235 = arith.constant 4 : index
    %c1_236 = arith.constant 1 : index
    %c0_237 = arith.constant 0 : index
    %c0_238 = arith.constant 0 : index
    %345 = vector.load %arg5[%c0_234, %c4_235, %c1_236, %c0_237, %c0_238] : memref<1x9x4x16x16xf32, #tpu.memory_space<vmem>>, vector<1x1x1x16x16xf32>
    %346 = vector.shape_cast %345 : vector<1x1x1x16x16xf32> to vector<16x16xf32>
    %c0_239 = arith.constant 0 : index
    %c4_240 = arith.constant 4 : index
    %c2_241 = arith.constant 2 : index
    %c0_242 = arith.constant 0 : index
    %c0_243 = arith.constant 0 : index
    %347 = vector.load %arg5[%c0_239, %c4_240, %c2_241, %c0_242, %c0_243] : memref<1x9x4x16x16xf32, #tpu.memory_space<vmem>>, vector<1x1x1x16x16xf32>
    %348 = vector.shape_cast %347 : vector<1x1x1x16x16xf32> to vector<16x16xf32>
    %c0_244 = arith.constant 0 : index
    %c4_245 = arith.constant 4 : index
    %c3_246 = arith.constant 3 : index
    %c0_247 = arith.constant 0 : index
    %c0_248 = arith.constant 0 : index
    %349 = vector.load %arg5[%c0_244, %c4_245, %c3_246, %c0_247, %c0_248] : memref<1x9x4x16x16xf32, #tpu.memory_space<vmem>>, vector<1x1x1x16x16xf32>
    %350 = vector.shape_cast %349 : vector<1x1x1x16x16xf32> to vector<16x16xf32>
    %351 = vector.broadcast %326 : f32 to vector<16x16xf32>
    %352 = arith.mulf %344, %351 : vector<16x16xf32>
    %353 = arith.addf %352, %336 : vector<16x16xf32>
    %354 = vector.broadcast %330 : f32 to vector<16x16xf32>
    %355 = arith.mulf %346, %354 : vector<16x16xf32>
    %356 = arith.addf %355, %342 : vector<16x16xf32>
    %357 = math.exp %348 : vector<16x16xf32>
    %358 = vector.broadcast %326 : f32 to vector<16x16xf32>
    %359 = arith.mulf %357, %358 : vector<16x16xf32>
    %cst_249 = arith.constant 5.000000e-01 : f32
    %360 = vector.broadcast %cst_249 : f32 to vector<16x16xf32>
    %361 = arith.mulf %360, %359 : vector<16x16xf32>
    %362 = math.exp %350 : vector<16x16xf32>
    %363 = vector.broadcast %330 : f32 to vector<16x16xf32>
    %364 = arith.mulf %362, %363 : vector<16x16xf32>
    %cst_250 = arith.constant 5.000000e-01 : f32
    %365 = vector.broadcast %cst_250 : f32 to vector<16x16xf32>
    %366 = arith.mulf %365, %364 : vector<16x16xf32>
    %367 = arith.subf %353, %361 : vector<16x16xf32>
    %cst_251 = arith.constant 0.000000e+00 : f32
    %368 = vector.broadcast %cst_251 : f32 to vector<16x16xf32>
    %369 = arith.maximumf %368, %367 : vector<16x16xf32>
    %370 = vector.broadcast %12 : f32 to vector<16x16xf32>
    %371 = arith.minimumf %370, %369 : vector<16x16xf32>
    %c0_252 = arith.constant 0 : index
    %c4_253 = arith.constant 4 : index
    %c0_254 = arith.constant 0 : index
    %c0_255 = arith.constant 0 : index
    %c0_256 = arith.constant 0 : index
    %372 = vector.load %arg6[%c0_252, %c4_253, %c0_254, %c0_255, %c0_256] : memref<1x9x4x16x16xf32, #tpu.memory_space<vmem>>, vector<1x1x1x16x16xf32>
    %373 = vector.shape_cast %372 : vector<1x1x1x16x16xf32> to vector<16x16xf32>
    %374 = vector.shape_cast %371 : vector<16x16xf32> to vector<1x1x1x16x16xf32>
    tpu.vector_store %arg6[%c0_252, %c4_253, %c0_254, %c0_255, %c0_256], %374 {strides = array<i32>} : memref<1x9x4x16x16xf32, #tpu.memory_space<vmem>>, vector<1x1x1x16x16xf32>,
    %375 = arith.subf %356, %366 : vector<16x16xf32>
    %cst_257 = arith.constant 0.000000e+00 : f32
    %376 = vector.broadcast %cst_257 : f32 to vector<16x16xf32>
    %377 = arith.maximumf %376, %375 : vector<16x16xf32>
    %378 = vector.broadcast %13 : f32 to vector<16x16xf32>
    %379 = arith.minimumf %378, %377 : vector<16x16xf32>
    %c0_258 = arith.constant 0 : index
    %c4_259 = arith.constant 4 : index
    %c1_260 = arith.constant 1 : index
    %c0_261 = arith.constant 0 : index
    %c0_262 = arith.constant 0 : index
    %380 = vector.load %arg6[%c0_258, %c4_259, %c1_260, %c0_261, %c0_262] : memref<1x9x4x16x16xf32, #tpu.memory_space<vmem>>, vector<1x1x1x16x16xf32>
    %381 = vector.shape_cast %380 : vector<1x1x1x16x16xf32> to vector<16x16xf32>
    %382 = vector.shape_cast %379 : vector<16x16xf32> to vector<1x1x1x16x16xf32>
    tpu.vector_store %arg6[%c0_258, %c4_259, %c1_260, %c0_261, %c0_262], %382 {strides = array<i32>} : memref<1x9x4x16x16xf32, #tpu.memory_space<vmem>>, vector<1x1x1x16x16xf32>,
    %383 = arith.addf %353, %361 : vector<16x16xf32>
    %cst_263 = arith.constant 0.000000e+00 : f32
    %384 = vector.broadcast %cst_263 : f32 to vector<16x16xf32>
    %385 = arith.maximumf %384, %383 : vector<16x16xf32>
    %386 = vector.broadcast %12 : f32 to vector<16x16xf32>
    %387 = arith.minimumf %386, %385 : vector<16x16xf32>
    %c0_264 = arith.constant 0 : index
    %c4_265 = arith.constant 4 : index
    %c2_266 = arith.constant 2 : index
    %c0_267 = arith.constant 0 : index
    %c0_268 = arith.constant 0 : index
    %388 = vector.load %arg6[%c0_264, %c4_265, %c2_266, %c0_267, %c0_268] : memref<1x9x4x16x16xf32, #tpu.memory_space<vmem>>, vector<1x1x1x16x16xf32>
    %389 = vector.shape_cast %388 : vector<1x1x1x16x16xf32> to vector<16x16xf32>
    %390 = vector.shape_cast %387 : vector<16x16xf32> to vector<1x1x1x16x16xf32>
    tpu.vector_store %arg6[%c0_264, %c4_265, %c2_266, %c0_267, %c0_268], %390 {strides = array<i32>} : memref<1x9x4x16x16xf32, #tpu.memory_space<vmem>>, vector<1x1x1x16x16xf32>,
    %391 = arith.addf %356, %366 : vector<16x16xf32>
    %cst_269 = arith.constant 0.000000e+00 : f32
    %392 = vector.broadcast %cst_269 : f32 to vector<16x16xf32>
    %393 = arith.maximumf %392, %391 : vector<16x16xf32>
    %394 = vector.broadcast %13 : f32 to vector<16x16xf32>
    %395 = arith.minimumf %394, %393 : vector<16x16xf32>
    %c0_270 = arith.constant 0 : index
    %c4_271 = arith.constant 4 : index
    %c3_272 = arith.constant 3 : index
    %c0_273 = arith.constant 0 : index
    %c0_274 = arith.constant 0 : index
    %396 = vector.load %arg6[%c0_270, %c4_271, %c3_272, %c0_273, %c0_274] : memref<1x9x4x16x16xf32, #tpu.memory_space<vmem>>, vector<1x1x1x16x16xf32>
    %397 = vector.shape_cast %396 : vector<1x1x1x16x16xf32> to vector<16x16xf32>
    %398 = vector.shape_cast %395 : vector<16x16xf32> to vector<1x1x1x16x16xf32>
    tpu.vector_store %arg6[%c0_270, %c4_271, %c3_272, %c0_273, %c0_274], %398 {strides = array<i32>} : memref<1x9x4x16x16xf32, #tpu.memory_space<vmem>>, vector<1x1x1x16x16xf32>,
    %c5_i32 = arith.constant 5 : i32
    %399 = arith.addi %0, %c5_i32 : i32
    %c4_i32_275 = arith.constant 4 : i32
    %400 = arith.muli %c4_i32_275, %399 : i32
    %c0_i32_276 = arith.constant 0 : i32
    %401 = arith.addi %400, %c0_i32_276 : i32
    %402 = arith.index_cast %401 : i32 to index
    %403 = memref.load %arg3[%402] : memref<36xf32, #tpu.memory_space<smem>>
    %c4_i32_277 = arith.constant 4 : i32
    %404 = arith.muli %c4_i32_277, %399 : i32
    %c1_i32_278 = arith.constant 1 : i32
    %405 = arith.addi %404, %c1_i32_278 : i32
    %406 = arith.index_cast %405 : i32 to index
    %407 = memref.load %arg3[%406] : memref<36xf32, #tpu.memory_space<smem>>
    %c4_i32_279 = arith.constant 4 : i32
    %408 = arith.muli %c4_i32_279, %399 : i32
    %c2_i32_280 = arith.constant 2 : i32
    %409 = arith.addi %408, %c2_i32_280 : i32
    %410 = arith.index_cast %409 : i32 to index
    %411 = memref.load %arg3[%410] : memref<36xf32, #tpu.memory_space<smem>>
    %412 = vector.broadcast %411 : f32 to vector<16x16xf32>
    %413 = arith.addf %412, %2 : vector<16x16xf32>
    %c4_i32_281 = arith.constant 4 : i32
    %414 = arith.muli %c4_i32_281, %399 : i32
    %c3_i32_282 = arith.constant 3 : i32
    %415 = arith.addi %414, %c3_i32_282 : i32
    %416 = arith.index_cast %415 : i32 to index
    %417 = memref.load %arg3[%416] : memref<36xf32, #tpu.memory_space<smem>>
    %418 = vector.broadcast %417 : f32 to vector<16x16xf32>
    %419 = arith.addf %418, %4 : vector<16x16xf32>
    %c0_283 = arith.constant 0 : index
    %c5 = arith.constant 5 : index
    %c0_284 = arith.constant 0 : index
    %c0_285 = arith.constant 0 : index
    %c0_286 = arith.constant 0 : index
    %420 = vector.load %arg5[%c0_283, %c5, %c0_284, %c0_285, %c0_286] : memref<1x9x4x16x16xf32, #tpu.memory_space<vmem>>, vector<1x1x1x16x16xf32>
    %421 = vector.shape_cast %420 : vector<1x1x1x16x16xf32> to vector<16x16xf32>
    %c0_287 = arith.constant 0 : index
    %c5_288 = arith.constant 5 : index
    %c1_289 = arith.constant 1 : index
    %c0_290 = arith.constant 0 : index
    %c0_291 = arith.constant 0 : index
    %422 = vector.load %arg5[%c0_287, %c5_288, %c1_289, %c0_290, %c0_291] : memref<1x9x4x16x16xf32, #tpu.memory_space<vmem>>, vector<1x1x1x16x16xf32>
    %423 = vector.shape_cast %422 : vector<1x1x1x16x16xf32> to vector<16x16xf32>
    %c0_292 = arith.constant 0 : index
    %c5_293 = arith.constant 5 : index
    %c2_294 = arith.constant 2 : index
    %c0_295 = arith.constant 0 : index
    %c0_296 = arith.constant 0 : index
    %424 = vector.load %arg5[%c0_292, %c5_293, %c2_294, %c0_295, %c0_296] : memref<1x9x4x16x16xf32, #tpu.memory_space<vmem>>, vector<1x1x1x16x16xf32>
    %425 = vector.shape_cast %424 : vector<1x1x1x16x16xf32> to vector<16x16xf32>
    %c0_297 = arith.constant 0 : index
    %c5_298 = arith.constant 5 : index
    %c3_299 = arith.constant 3 : index
    %c0_300 = arith.constant 0 : index
    %c0_301 = arith.constant 0 : index
    %426 = vector.load %arg5[%c0_297, %c5_298, %c3_299, %c0_300, %c0_301] : memref<1x9x4x16x16xf32, #tpu.memory_space<vmem>>, vector<1x1x1x16x16xf32>
    %427 = vector.shape_cast %426 : vector<1x1x1x16x16xf32> to vector<16x16xf32>
    %428 = vector.broadcast %403 : f32 to vector<16x16xf32>
    %429 = arith.mulf %421, %428 : vector<16x16xf32>
    %430 = arith.addf %429, %413 : vector<16x16xf32>
    %431 = vector.broadcast %407 : f32 to vector<16x16xf32>
    %432 = arith.mulf %423, %431 : vector<16x16xf32>
    %433 = arith.addf %432, %419 : vector<16x16xf32>
    %434 = math.exp %425 : vector<16x16xf32>
    %435 = vector.broadcast %403 : f32 to vector<16x16xf32>
    %436 = arith.mulf %434, %435 : vector<16x16xf32>
    %cst_302 = arith.constant 5.000000e-01 : f32
    %437 = vector.broadcast %cst_302 : f32 to vector<16x16xf32>
    %438 = arith.mulf %437, %436 : vector<16x16xf32>
    %439 = math.exp %427 : vector<16x16xf32>
    %440 = vector.broadcast %407 : f32 to vector<16x16xf32>
    %441 = arith.mulf %439, %440 : vector<16x16xf32>
    %cst_303 = arith.constant 5.000000e-01 : f32
    %442 = vector.broadcast %cst_303 : f32 to vector<16x16xf32>
    %443 = arith.mulf %442, %441 : vector<16x16xf32>
    %444 = arith.subf %430, %438 : vector<16x16xf32>
    %cst_304 = arith.constant 0.000000e+00 : f32
    %445 = vector.broadcast %cst_304 : f32 to vector<16x16xf32>
    %446 = arith.maximumf %445, %444 : vector<16x16xf32>
    %447 = vector.broadcast %12 : f32 to vector<16x16xf32>
    %448 = arith.minimumf %447, %446 : vector<16x16xf32>
    %c0_305 = arith.constant 0 : index
    %c5_306 = arith.constant 5 : index
    %c0_307 = arith.constant 0 : index
    %c0_308 = arith.constant 0 : index
    %c0_309 = arith.constant 0 : index
    %449 = vector.load %arg6[%c0_305, %c5_306, %c0_307, %c0_308, %c0_309] : memref<1x9x4x16x16xf32, #tpu.memory_space<vmem>>, vector<1x1x1x16x16xf32>
    %450 = vector.shape_cast %449 : vector<1x1x1x16x16xf32> to vector<16x16xf32>
    %451 = vector.shape_cast %448 : vector<16x16xf32> to vector<1x1x1x16x16xf32>
    tpu.vector_store %arg6[%c0_305, %c5_306, %c0_307, %c0_308, %c0_309], %451 {strides = array<i32>} : memref<1x9x4x16x16xf32, #tpu.memory_space<vmem>>, vector<1x1x1x16x16xf32>,
    %452 = arith.subf %433, %443 : vector<16x16xf32>
    %cst_310 = arith.constant 0.000000e+00 : f32
    %453 = vector.broadcast %cst_310 : f32 to vector<16x16xf32>
    %454 = arith.maximumf %453, %452 : vector<16x16xf32>
    %455 = vector.broadcast %13 : f32 to vector<16x16xf32>
    %456 = arith.minimumf %455, %454 : vector<16x16xf32>
    %c0_311 = arith.constant 0 : index
    %c5_312 = arith.constant 5 : index
    %c1_313 = arith.constant 1 : index
    %c0_314 = arith.constant 0 : index
    %c0_315 = arith.constant 0 : index
    %457 = vector.load %arg6[%c0_311, %c5_312, %c1_313, %c0_314, %c0_315] : memref<1x9x4x16x16xf32, #tpu.memory_space<vmem>>, vector<1x1x1x16x16xf32>
    %458 = vector.shape_cast %457 : vector<1x1x1x16x16xf32> to vector<16x16xf32>
    %459 = vector.shape_cast %456 : vector<16x16xf32> to vector<1x1x1x16x16xf32>
    tpu.vector_store %arg6[%c0_311, %c5_312, %c1_313, %c0_314, %c0_315], %459 {strides = array<i32>} : memref<1x9x4x16x16xf32, #tpu.memory_space<vmem>>, vector<1x1x1x16x16xf32>,
    %460 = arith.addf %430, %438 : vector<16x16xf32>
    %cst_316 = arith.constant 0.000000e+00 : f32
    %461 = vector.broadcast %cst_316 : f32 to vector<16x16xf32>
    %462 = arith.maximumf %461, %460 : vector<16x16xf32>
    %463 = vector.broadcast %12 : f32 to vector<16x16xf32>
    %464 = arith.minimumf %463, %462 : vector<16x16xf32>
    %c0_317 = arith.constant 0 : index
    %c5_318 = arith.constant 5 : index
    %c2_319 = arith.constant 2 : index
    %c0_320 = arith.constant 0 : index
    %c0_321 = arith.constant 0 : index
    %465 = vector.load %arg6[%c0_317, %c5_318, %c2_319, %c0_320, %c0_321] : memref<1x9x4x16x16xf32, #tpu.memory_space<vmem>>, vector<1x1x1x16x16xf32>
    %466 = vector.shape_cast %465 : vector<1x1x1x16x16xf32> to vector<16x16xf32>
    %467 = vector.shape_cast %464 : vector<16x16xf32> to vector<1x1x1x16x16xf32>
    tpu.vector_store %arg6[%c0_317, %c5_318, %c2_319, %c0_320, %c0_321], %467 {strides = array<i32>} : memref<1x9x4x16x16xf32, #tpu.memory_space<vmem>>, vector<1x1x1x16x16xf32>,
    %468 = arith.addf %433, %443 : vector<16x16xf32>
    %cst_322 = arith.constant 0.000000e+00 : f32
    %469 = vector.broadcast %cst_322 : f32 to vector<16x16xf32>
    %470 = arith.maximumf %469, %468 : vector<16x16xf32>
    %471 = vector.broadcast %13 : f32 to vector<16x16xf32>
    %472 = arith.minimumf %471, %470 : vector<16x16xf32>
    %c0_323 = arith.constant 0 : index
    %c5_324 = arith.constant 5 : index
    %c3_325 = arith.constant 3 : index
    %c0_326 = arith.constant 0 : index
    %c0_327 = arith.constant 0 : index
    %473 = vector.load %arg6[%c0_323, %c5_324, %c3_325, %c0_326, %c0_327] : memref<1x9x4x16x16xf32, #tpu.memory_space<vmem>>, vector<1x1x1x16x16xf32>
    %474 = vector.shape_cast %473 : vector<1x1x1x16x16xf32> to vector<16x16xf32>
    %475 = vector.shape_cast %472 : vector<16x16xf32> to vector<1x1x1x16x16xf32>
    tpu.vector_store %arg6[%c0_323, %c5_324, %c3_325, %c0_326, %c0_327], %475 {strides = array<i32>} : memref<1x9x4x16x16xf32, #tpu.memory_space<vmem>>, vector<1x1x1x16x16xf32>,
    %c6_i32 = arith.constant 6 : i32
    %476 = arith.addi %0, %c6_i32 : i32
    %c4_i32_328 = arith.constant 4 : i32
    %477 = arith.muli %c4_i32_328, %476 : i32
    %c0_i32_329 = arith.constant 0 : i32
    %478 = arith.addi %477, %c0_i32_329 : i32
    %479 = arith.index_cast %478 : i32 to index
    %480 = memref.load %arg3[%479] : memref<36xf32, #tpu.memory_space<smem>>
    %c4_i32_330 = arith.constant 4 : i32
    %481 = arith.muli %c4_i32_330, %476 : i32
    %c1_i32_331 = arith.constant 1 : i32
    %482 = arith.addi %481, %c1_i32_331 : i32
    %483 = arith.index_cast %482 : i32 to index
    %484 = memref.load %arg3[%483] : memref<36xf32, #tpu.memory_space<smem>>
    %c4_i32_332 = arith.constant 4 : i32
    %485 = arith.muli %c4_i32_332, %476 : i32
    %c2_i32_333 = arith.constant 2 : i32
    %486 = arith.addi %485, %c2_i32_333 : i32
    %487 = arith.index_cast %486 : i32 to index
    %488 = memref.load %arg3[%487] : memref<36xf32, #tpu.memory_space<smem>>
    %489 = vector.broadcast %488 : f32 to vector<16x16xf32>
    %490 = arith.addf %489, %2 : vector<16x16xf32>
    %c4_i32_334 = arith.constant 4 : i32
    %491 = arith.muli %c4_i32_334, %476 : i32
    %c3_i32_335 = arith.constant 3 : i32
    %492 = arith.addi %491, %c3_i32_335 : i32
    %493 = arith.index_cast %492 : i32 to index
    %494 = memref.load %arg3[%493] : memref<36xf32, #tpu.memory_space<smem>>
    %495 = vector.broadcast %494 : f32 to vector<16x16xf32>
    %496 = arith.addf %495, %4 : vector<16x16xf32>
    %c0_336 = arith.constant 0 : index
    %c6 = arith.constant 6 : index
    %c0_337 = arith.constant 0 : index
    %c0_338 = arith.constant 0 : index
    %c0_339 = arith.constant 0 : index
    %497 = vector.load %arg5[%c0_336, %c6, %c0_337, %c0_338, %c0_339] : memref<1x9x4x16x16xf32, #tpu.memory_space<vmem>>, vector<1x1x1x16x16xf32>
    %498 = vector.shape_cast %497 : vector<1x1x1x16x16xf32> to vector<16x16xf32>
    %c0_340 = arith.constant 0 : index
    %c6_341 = arith.constant 6 : index
    %c1_342 = arith.constant 1 : index
    %c0_343 = arith.constant 0 : index
    %c0_344 = arith.constant 0 : index
    %499 = vector.load %arg5[%c0_340, %c6_341, %c1_342, %c0_343, %c0_344] : memref<1x9x4x16x16xf32, #tpu.memory_space<vmem>>, vector<1x1x1x16x16xf32>
    %500 = vector.shape_cast %499 : vector<1x1x1x16x16xf32> to vector<16x16xf32>
    %c0_345 = arith.constant 0 : index
    %c6_346 = arith.constant 6 : index
    %c2_347 = arith.constant 2 : index
    %c0_348 = arith.constant 0 : index
    %c0_349 = arith.constant 0 : index
    %501 = vector.load %arg5[%c0_345, %c6_346, %c2_347, %c0_348, %c0_349] : memref<1x9x4x16x16xf32, #tpu.memory_space<vmem>>, vector<1x1x1x16x16xf32>
    %502 = vector.shape_cast %501 : vector<1x1x1x16x16xf32> to vector<16x16xf32>
    %c0_350 = arith.constant 0 : index
    %c6_351 = arith.constant 6 : index
    %c3_352 = arith.constant 3 : index
    %c0_353 = arith.constant 0 : index
    %c0_354 = arith.constant 0 : index
    %503 = vector.load %arg5[%c0_350, %c6_351, %c3_352, %c0_353, %c0_354] : memref<1x9x4x16x16xf32, #tpu.memory_space<vmem>>, vector<1x1x1x16x16xf32>
    %504 = vector.shape_cast %503 : vector<1x1x1x16x16xf32> to vector<16x16xf32>
    %505 = vector.broadcast %480 : f32 to vector<16x16xf32>
    %506 = arith.mulf %498, %505 : vector<16x16xf32>
    %507 = arith.addf %506, %490 : vector<16x16xf32>
    %508 = vector.broadcast %484 : f32 to vector<16x16xf32>
    %509 = arith.mulf %500, %508 : vector<16x16xf32>
    %510 = arith.addf %509, %496 : vector<16x16xf32>
    %511 = math.exp %502 : vector<16x16xf32>
    %512 = vector.broadcast %480 : f32 to vector<16x16xf32>
    %513 = arith.mulf %511, %512 : vector<16x16xf32>
    %cst_355 = arith.constant 5.000000e-01 : f32
    %514 = vector.broadcast %cst_355 : f32 to vector<16x16xf32>
    %515 = arith.mulf %514, %513 : vector<16x16xf32>
    %516 = math.exp %504 : vector<16x16xf32>
    %517 = vector.broadcast %484 : f32 to vector<16x16xf32>
    %518 = arith.mulf %516, %517 : vector<16x16xf32>
    %cst_356 = arith.constant 5.000000e-01 : f32
    %519 = vector.broadcast %cst_356 : f32 to vector<16x16xf32>
    %520 = arith.mulf %519, %518 : vector<16x16xf32>
    %521 = arith.subf %507, %515 : vector<16x16xf32>
    %cst_357 = arith.constant 0.000000e+00 : f32
    %522 = vector.broadcast %cst_357 : f32 to vector<16x16xf32>
    %523 = arith.maximumf %522, %521 : vector<16x16xf32>
    %524 = vector.broadcast %12 : f32 to vector<16x16xf32>
    %525 = arith.minimumf %524, %523 : vector<16x16xf32>
    %c0_358 = arith.constant 0 : index
    %c6_359 = arith.constant 6 : index
    %c0_360 = arith.constant 0 : index
    %c0_361 = arith.constant 0 : index
    %c0_362 = arith.constant 0 : index
    %526 = vector.load %arg6[%c0_358, %c6_359, %c0_360, %c0_361, %c0_362] : memref<1x9x4x16x16xf32, #tpu.memory_space<vmem>>, vector<1x1x1x16x16xf32>
    %527 = vector.shape_cast %526 : vector<1x1x1x16x16xf32> to vector<16x16xf32>
    %528 = vector.shape_cast %525 : vector<16x16xf32> to vector<1x1x1x16x16xf32>
    tpu.vector_store %arg6[%c0_358, %c6_359, %c0_360, %c0_361, %c0_362], %528 {strides = array<i32>} : memref<1x9x4x16x16xf32, #tpu.memory_space<vmem>>, vector<1x1x1x16x16xf32>,
    %529 = arith.subf %510, %520 : vector<16x16xf32>
    %cst_363 = arith.constant 0.000000e+00 : f32
    %530 = vector.broadcast %cst_363 : f32 to vector<16x16xf32>
    %531 = arith.maximumf %530, %529 : vector<16x16xf32>
    %532 = vector.broadcast %13 : f32 to vector<16x16xf32>
    %533 = arith.minimumf %532, %531 : vector<16x16xf32>
    %c0_364 = arith.constant 0 : index
    %c6_365 = arith.constant 6 : index
    %c1_366 = arith.constant 1 : index
    %c0_367 = arith.constant 0 : index
    %c0_368 = arith.constant 0 : index
    %534 = vector.load %arg6[%c0_364, %c6_365, %c1_366, %c0_367, %c0_368] : memref<1x9x4x16x16xf32, #tpu.memory_space<vmem>>, vector<1x1x1x16x16xf32>
    %535 = vector.shape_cast %534 : vector<1x1x1x16x16xf32> to vector<16x16xf32>
    %536 = vector.shape_cast %533 : vector<16x16xf32> to vector<1x1x1x16x16xf32>
    tpu.vector_store %arg6[%c0_364, %c6_365, %c1_366, %c0_367, %c0_368], %536 {strides = array<i32>} : memref<1x9x4x16x16xf32, #tpu.memory_space<vmem>>, vector<1x1x1x16x16xf32>,
    %537 = arith.addf %507, %515 : vector<16x16xf32>
    %cst_369 = arith.constant 0.000000e+00 : f32
    %538 = vector.broadcast %cst_369 : f32 to vector<16x16xf32>
    %539 = arith.maximumf %538, %537 : vector<16x16xf32>
    %540 = vector.broadcast %12 : f32 to vector<16x16xf32>
    %541 = arith.minimumf %540, %539 : vector<16x16xf32>
    %c0_370 = arith.constant 0 : index
    %c6_371 = arith.constant 6 : index
    %c2_372 = arith.constant 2 : index
    %c0_373 = arith.constant 0 : index
    %c0_374 = arith.constant 0 : index
    %542 = vector.load %arg6[%c0_370, %c6_371, %c2_372, %c0_373, %c0_374] : memref<1x9x4x16x16xf32, #tpu.memory_space<vmem>>, vector<1x1x1x16x16xf32>
    %543 = vector.shape_cast %542 : vector<1x1x1x16x16xf32> to vector<16x16xf32>
    %544 = vector.shape_cast %541 : vector<16x16xf32> to vector<1x1x1x16x16xf32>
    tpu.vector_store %arg6[%c0_370, %c6_371, %c2_372, %c0_373, %c0_374], %544 {strides = array<i32>} : memref<1x9x4x16x16xf32, #tpu.memory_space<vmem>>, vector<1x1x1x16x16xf32>,
    %545 = arith.addf %510, %520 : vector<16x16xf32>
    %cst_375 = arith.constant 0.000000e+00 : f32
    %546 = vector.broadcast %cst_375 : f32 to vector<16x16xf32>
    %547 = arith.maximumf %546, %545 : vector<16x16xf32>
    %548 = vector.broadcast %13 : f32 to vector<16x16xf32>
    %549 = arith.minimumf %548, %547 : vector<16x16xf32>
    %c0_376 = arith.constant 0 : index
    %c6_377 = arith.constant 6 : index
    %c3_378 = arith.constant 3 : index
    %c0_379 = arith.constant 0 : index
    %c0_380 = arith.constant 0 : index
    %550 = vector.load %arg6[%c0_376, %c6_377, %c3_378, %c0_379, %c0_380] : memref<1x9x4x16x16xf32, #tpu.memory_space<vmem>>, vector<1x1x1x16x16xf32>
    %551 = vector.shape_cast %550 : vector<1x1x1x16x16xf32> to vector<16x16xf32>
    %552 = vector.shape_cast %549 : vector<16x16xf32> to vector<1x1x1x16x16xf32>
    tpu.vector_store %arg6[%c0_376, %c6_377, %c3_378, %c0_379, %c0_380], %552 {strides = array<i32>} : memref<1x9x4x16x16xf32, #tpu.memory_space<vmem>>, vector<1x1x1x16x16xf32>,
    %c7_i32 = arith.constant 7 : i32
    %553 = arith.addi %0, %c7_i32 : i32
    %c4_i32_381 = arith.constant 4 : i32
    %554 = arith.muli %c4_i32_381, %553 : i32
    %c0_i32_382 = arith.constant 0 : i32
    %555 = arith.addi %554, %c0_i32_382 : i32
    %556 = arith.index_cast %555 : i32 to index
    %557 = memref.load %arg3[%556] : memref<36xf32, #tpu.memory_space<smem>>
    %c4_i32_383 = arith.constant 4 : i32
    %558 = arith.muli %c4_i32_383, %553 : i32
    %c1_i32_384 = arith.constant 1 : i32
    %559 = arith.addi %558, %c1_i32_384 : i32
    %560 = arith.index_cast %559 : i32 to index
    %561 = memref.load %arg3[%560] : memref<36xf32, #tpu.memory_space<smem>>
    %c4_i32_385 = arith.constant 4 : i32
    %562 = arith.muli %c4_i32_385, %553 : i32
    %c2_i32_386 = arith.constant 2 : i32
    %563 = arith.addi %562, %c2_i32_386 : i32
    %564 = arith.index_cast %563 : i32 to index
    %565 = memref.load %arg3[%564] : memref<36xf32, #tpu.memory_space<smem>>
    %566 = vector.broadcast %565 : f32 to vector<16x16xf32>
    %567 = arith.addf %566, %2 : vector<16x16xf32>
    %c4_i32_387 = arith.constant 4 : i32
    %568 = arith.muli %c4_i32_387, %553 : i32
    %c3_i32_388 = arith.constant 3 : i32
    %569 = arith.addi %568, %c3_i32_388 : i32
    %570 = arith.index_cast %569 : i32 to index
    %571 = memref.load %arg3[%570] : memref<36xf32, #tpu.memory_space<smem>>
    %572 = vector.broadcast %571 : f32 to vector<16x16xf32>
    %573 = arith.addf %572, %4 : vector<16x16xf32>
    %c0_389 = arith.constant 0 : index
    %c7 = arith.constant 7 : index
    %c0_390 = arith.constant 0 : index
    %c0_391 = arith.constant 0 : index
    %c0_392 = arith.constant 0 : index
    %574 = vector.load %arg5[%c0_389, %c7, %c0_390, %c0_391, %c0_392] : memref<1x9x4x16x16xf32, #tpu.memory_space<vmem>>, vector<1x1x1x16x16xf32>
    %575 = vector.shape_cast %574 : vector<1x1x1x16x16xf32> to vector<16x16xf32>
    %c0_393 = arith.constant 0 : index
    %c7_394 = arith.constant 7 : index
    %c1_395 = arith.constant 1 : index
    %c0_396 = arith.constant 0 : index
    %c0_397 = arith.constant 0 : index
    %576 = vector.load %arg5[%c0_393, %c7_394, %c1_395, %c0_396, %c0_397] : memref<1x9x4x16x16xf32, #tpu.memory_space<vmem>>, vector<1x1x1x16x16xf32>
    %577 = vector.shape_cast %576 : vector<1x1x1x16x16xf32> to vector<16x16xf32>
    %c0_398 = arith.constant 0 : index
    %c7_399 = arith.constant 7 : index
    %c2_400 = arith.constant 2 : index
    %c0_401 = arith.constant 0 : index
    %c0_402 = arith.constant 0 : index
    %578 = vector.load %arg5[%c0_398, %c7_399, %c2_400, %c0_401, %c0_402] : memref<1x9x4x16x16xf32, #tpu.memory_space<vmem>>, vector<1x1x1x16x16xf32>
    %579 = vector.shape_cast %578 : vector<1x1x1x16x16xf32> to vector<16x16xf32>
    %c0_403 = arith.constant 0 : index
    %c7_404 = arith.constant 7 : index
    %c3_405 = arith.constant 3 : index
    %c0_406 = arith.constant 0 : index
    %c0_407 = arith.constant 0 : index
    %580 = vector.load %arg5[%c0_403, %c7_404, %c3_405, %c0_406, %c0_407] : memref<1x9x4x16x16xf32, #tpu.memory_space<vmem>>, vector<1x1x1x16x16xf32>
    %581 = vector.shape_cast %580 : vector<1x1x1x16x16xf32> to vector<16x16xf32>
    %582 = vector.broadcast %557 : f32 to vector<16x16xf32>
    %583 = arith.mulf %575, %582 : vector<16x16xf32>
    %584 = arith.addf %583, %567 : vector<16x16xf32>
    %585 = vector.broadcast %561 : f32 to vector<16x16xf32>
    %586 = arith.mulf %577, %585 : vector<16x16xf32>
    %587 = arith.addf %586, %573 : vector<16x16xf32>
    %588 = math.exp %579 : vector<16x16xf32>
    %589 = vector.broadcast %557 : f32 to vector<16x16xf32>
    %590 = arith.mulf %588, %589 : vector<16x16xf32>
    %cst_408 = arith.constant 5.000000e-01 : f32
    %591 = vector.broadcast %cst_408 : f32 to vector<16x16xf32>
    %592 = arith.mulf %591, %590 : vector<16x16xf32>
    %593 = math.exp %581 : vector<16x16xf32>
    %594 = vector.broadcast %561 : f32 to vector<16x16xf32>
    %595 = arith.mulf %593, %594 : vector<16x16xf32>
    %cst_409 = arith.constant 5.000000e-01 : f32
    %596 = vector.broadcast %cst_409 : f32 to vector<16x16xf32>
    %597 = arith.mulf %596, %595 : vector<16x16xf32>
    %598 = arith.subf %584, %592 : vector<16x16xf32>
    %cst_410 = arith.constant 0.000000e+00 : f32
    %599 = vector.broadcast %cst_410 : f32 to vector<16x16xf32>
    %600 = arith.maximumf %599, %598 : vector<16x16xf32>
    %601 = vector.broadcast %12 : f32 to vector<16x16xf32>
    %602 = arith.minimumf %601, %600 : vector<16x16xf32>
    %c0_411 = arith.constant 0 : index
    %c7_412 = arith.constant 7 : index
    %c0_413 = arith.constant 0 : index
    %c0_414 = arith.constant 0 : index
    %c0_415 = arith.constant 0 : index
    %603 = vector.load %arg6[%c0_411, %c7_412, %c0_413, %c0_414, %c0_415] : memref<1x9x4x16x16xf32, #tpu.memory_space<vmem>>, vector<1x1x1x16x16xf32>
    %604 = vector.shape_cast %603 : vector<1x1x1x16x16xf32> to vector<16x16xf32>
    %605 = vector.shape_cast %602 : vector<16x16xf32> to vector<1x1x1x16x16xf32>
    tpu.vector_store %arg6[%c0_411, %c7_412, %c0_413, %c0_414, %c0_415], %605 {strides = array<i32>} : memref<1x9x4x16x16xf32, #tpu.memory_space<vmem>>, vector<1x1x1x16x16xf32>,
    %606 = arith.subf %587, %597 : vector<16x16xf32>
    %cst_416 = arith.constant 0.000000e+00 : f32
    %607 = vector.broadcast %cst_416 : f32 to vector<16x16xf32>
    %608 = arith.maximumf %607, %606 : vector<16x16xf32>
    %609 = vector.broadcast %13 : f32 to vector<16x16xf32>
    %610 = arith.minimumf %609, %608 : vector<16x16xf32>
    %c0_417 = arith.constant 0 : index
    %c7_418 = arith.constant 7 : index
    %c1_419 = arith.constant 1 : index
    %c0_420 = arith.constant 0 : index
    %c0_421 = arith.constant 0 : index
    %611 = vector.load %arg6[%c0_417, %c7_418, %c1_419, %c0_420, %c0_421] : memref<1x9x4x16x16xf32, #tpu.memory_space<vmem>>, vector<1x1x1x16x16xf32>
    %612 = vector.shape_cast %611 : vector<1x1x1x16x16xf32> to vector<16x16xf32>
    %613 = vector.shape_cast %610 : vector<16x16xf32> to vector<1x1x1x16x16xf32>
    tpu.vector_store %arg6[%c0_417, %c7_418, %c1_419, %c0_420, %c0_421], %613 {strides = array<i32>} : memref<1x9x4x16x16xf32, #tpu.memory_space<vmem>>, vector<1x1x1x16x16xf32>,
    %614 = arith.addf %584, %592 : vector<16x16xf32>
    %cst_422 = arith.constant 0.000000e+00 : f32
    %615 = vector.broadcast %cst_422 : f32 to vector<16x16xf32>
    %616 = arith.maximumf %615, %614 : vector<16x16xf32>
    %617 = vector.broadcast %12 : f32 to vector<16x16xf32>
    %618 = arith.minimumf %617, %616 : vector<16x16xf32>
    %c0_423 = arith.constant 0 : index
    %c7_424 = arith.constant 7 : index
    %c2_425 = arith.constant 2 : index
    %c0_426 = arith.constant 0 : index
    %c0_427 = arith.constant 0 : index
    %619 = vector.load %arg6[%c0_423, %c7_424, %c2_425, %c0_426, %c0_427] : memref<1x9x4x16x16xf32, #tpu.memory_space<vmem>>, vector<1x1x1x16x16xf32>
    %620 = vector.shape_cast %619 : vector<1x1x1x16x16xf32> to vector<16x16xf32>
    %621 = vector.shape_cast %618 : vector<16x16xf32> to vector<1x1x1x16x16xf32>
    tpu.vector_store %arg6[%c0_423, %c7_424, %c2_425, %c0_426, %c0_427], %621 {strides = array<i32>} : memref<1x9x4x16x16xf32, #tpu.memory_space<vmem>>, vector<1x1x1x16x16xf32>,
    %622 = arith.addf %587, %597 : vector<16x16xf32>
    %cst_428 = arith.constant 0.000000e+00 : f32
    %623 = vector.broadcast %cst_428 : f32 to vector<16x16xf32>
    %624 = arith.maximumf %623, %622 : vector<16x16xf32>
    %625 = vector.broadcast %13 : f32 to vector<16x16xf32>
    %626 = arith.minimumf %625, %624 : vector<16x16xf32>
    %c0_429 = arith.constant 0 : index
    %c7_430 = arith.constant 7 : index
    %c3_431 = arith.constant 3 : index
    %c0_432 = arith.constant 0 : index
    %c0_433 = arith.constant 0 : index
    %627 = vector.load %arg6[%c0_429, %c7_430, %c3_431, %c0_432, %c0_433] : memref<1x9x4x16x16xf32, #tpu.memory_space<vmem>>, vector<1x1x1x16x16xf32>
    %628 = vector.shape_cast %627 : vector<1x1x1x16x16xf32> to vector<16x16xf32>
    %629 = vector.shape_cast %626 : vector<16x16xf32> to vector<1x1x1x16x16xf32>
    tpu.vector_store %arg6[%c0_429, %c7_430, %c3_431, %c0_432, %c0_433], %629 {strides = array<i32>} : memref<1x9x4x16x16xf32, #tpu.memory_space<vmem>>, vector<1x1x1x16x16xf32>,
    %c8_i32 = arith.constant 8 : i32
    %630 = arith.addi %0, %c8_i32 : i32
    %c4_i32_434 = arith.constant 4 : i32
    %631 = arith.muli %c4_i32_434, %630 : i32
    %c0_i32_435 = arith.constant 0 : i32
    %632 = arith.addi %631, %c0_i32_435 : i32
    %633 = arith.index_cast %632 : i32 to index
    %634 = memref.load %arg3[%633] : memref<36xf32, #tpu.memory_space<smem>>
    %c4_i32_436 = arith.constant 4 : i32
    %635 = arith.muli %c4_i32_436, %630 : i32
    %c1_i32_437 = arith.constant 1 : i32
    %636 = arith.addi %635, %c1_i32_437 : i32
    %637 = arith.index_cast %636 : i32 to index
    %638 = memref.load %arg3[%637] : memref<36xf32, #tpu.memory_space<smem>>
    %c4_i32_438 = arith.constant 4 : i32
    %639 = arith.muli %c4_i32_438, %630 : i32
    %c2_i32_439 = arith.constant 2 : i32
    %640 = arith.addi %639, %c2_i32_439 : i32
    %641 = arith.index_cast %640 : i32 to index
    %642 = memref.load %arg3[%641] : memref<36xf32, #tpu.memory_space<smem>>
    %643 = vector.broadcast %642 : f32 to vector<16x16xf32>
    %644 = arith.addf %643, %2 : vector<16x16xf32>
    %c4_i32_440 = arith.constant 4 : i32
    %645 = arith.muli %c4_i32_440, %630 : i32
    %c3_i32_441 = arith.constant 3 : i32
    %646 = arith.addi %645, %c3_i32_441 : i32
    %647 = arith.index_cast %646 : i32 to index
    %648 = memref.load %arg3[%647] : memref<36xf32, #tpu.memory_space<smem>>
    %649 = vector.broadcast %648 : f32 to vector<16x16xf32>
    %650 = arith.addf %649, %4 : vector<16x16xf32>
    %c0_442 = arith.constant 0 : index
    %c8 = arith.constant 8 : index
    %c0_443 = arith.constant 0 : index
    %c0_444 = arith.constant 0 : index
    %c0_445 = arith.constant 0 : index
    %651 = vector.load %arg5[%c0_442, %c8, %c0_443, %c0_444, %c0_445] : memref<1x9x4x16x16xf32, #tpu.memory_space<vmem>>, vector<1x1x1x16x16xf32>
    %652 = vector.shape_cast %651 : vector<1x1x1x16x16xf32> to vector<16x16xf32>
    %c0_446 = arith.constant 0 : index
    %c8_447 = arith.constant 8 : index
    %c1_448 = arith.constant 1 : index
    %c0_449 = arith.constant 0 : index
    %c0_450 = arith.constant 0 : index
    %653 = vector.load %arg5[%c0_446, %c8_447, %c1_448, %c0_449, %c0_450] : memref<1x9x4x16x16xf32, #tpu.memory_space<vmem>>, vector<1x1x1x16x16xf32>
    %654 = vector.shape_cast %653 : vector<1x1x1x16x16xf32> to vector<16x16xf32>
    %c0_451 = arith.constant 0 : index
    %c8_452 = arith.constant 8 : index
    %c2_453 = arith.constant 2 : index
    %c0_454 = arith.constant 0 : index
    %c0_455 = arith.constant 0 : index
    %655 = vector.load %arg5[%c0_451, %c8_452, %c2_453, %c0_454, %c0_455] : memref<1x9x4x16x16xf32, #tpu.memory_space<vmem>>, vector<1x1x1x16x16xf32>
    %656 = vector.shape_cast %655 : vector<1x1x1x16x16xf32> to vector<16x16xf32>
    %c0_456 = arith.constant 0 : index
    %c8_457 = arith.constant 8 : index
    %c3_458 = arith.constant 3 : index
    %c0_459 = arith.constant 0 : index
    %c0_460 = arith.constant 0 : index
    %657 = vector.load %arg5[%c0_456, %c8_457, %c3_458, %c0_459, %c0_460] : memref<1x9x4x16x16xf32, #tpu.memory_space<vmem>>, vector<1x1x1x16x16xf32>
    %658 = vector.shape_cast %657 : vector<1x1x1x16x16xf32> to vector<16x16xf32>
    %659 = vector.broadcast %634 : f32 to vector<16x16xf32>
    %660 = arith.mulf %652, %659 : vector<16x16xf32>
    %661 = arith.addf %660, %644 : vector<16x16xf32>
    %662 = vector.broadcast %638 : f32 to vector<16x16xf32>
    %663 = arith.mulf %654, %662 : vector<16x16xf32>
    %664 = arith.addf %663, %650 : vector<16x16xf32>
    %665 = math.exp %656 : vector<16x16xf32>
    %666 = vector.broadcast %634 : f32 to vector<16x16xf32>
    %667 = arith.mulf %665, %666 : vector<16x16xf32>
    %cst_461 = arith.constant 5.000000e-01 : f32
    %668 = vector.broadcast %cst_461 : f32 to vector<16x16xf32>
    %669 = arith.mulf %668, %667 : vector<16x16xf32>
    %670 = math.exp %658 : vector<16x16xf32>
    %671 = vector.broadcast %638 : f32 to vector<16x16xf32>
    %672 = arith.mulf %670, %671 : vector<16x16xf32>
    %cst_462 = arith.constant 5.000000e-01 : f32
    %673 = vector.broadcast %cst_462 : f32 to vector<16x16xf32>
    %674 = arith.mulf %673, %672 : vector<16x16xf32>
    %675 = arith.subf %661, %669 : vector<16x16xf32>
    %cst_463 = arith.constant 0.000000e+00 : f32
    %676 = vector.broadcast %cst_463 : f32 to vector<16x16xf32>
    %677 = arith.maximumf %676, %675 : vector<16x16xf32>
    %678 = vector.broadcast %12 : f32 to vector<16x16xf32>
    %679 = arith.minimumf %678, %677 : vector<16x16xf32>
    %c0_464 = arith.constant 0 : index
    %c8_465 = arith.constant 8 : index
    %c0_466 = arith.constant 0 : index
    %c0_467 = arith.constant 0 : index
    %c0_468 = arith.constant 0 : index
    %680 = vector.load %arg6[%c0_464, %c8_465, %c0_466, %c0_467, %c0_468] : memref<1x9x4x16x16xf32, #tpu.memory_space<vmem>>, vector<1x1x1x16x16xf32>
    %681 = vector.shape_cast %680 : vector<1x1x1x16x16xf32> to vector<16x16xf32>
    %682 = vector.shape_cast %679 : vector<16x16xf32> to vector<1x1x1x16x16xf32>
    tpu.vector_store %arg6[%c0_464, %c8_465, %c0_466, %c0_467, %c0_468], %682 {strides = array<i32>} : memref<1x9x4x16x16xf32, #tpu.memory_space<vmem>>, vector<1x1x1x16x16xf32>,
    %683 = arith.subf %664, %674 : vector<16x16xf32>
    %cst_469 = arith.constant 0.000000e+00 : f32
    %684 = vector.broadcast %cst_469 : f32 to vector<16x16xf32>
    %685 = arith.maximumf %684, %683 : vector<16x16xf32>
    %686 = vector.broadcast %13 : f32 to vector<16x16xf32>
    %687 = arith.minimumf %686, %685 : vector<16x16xf32>
    %c0_470 = arith.constant 0 : index
    %c8_471 = arith.constant 8 : index
    %c1_472 = arith.constant 1 : index
    %c0_473 = arith.constant 0 : index
    %c0_474 = arith.constant 0 : index
    %688 = vector.load %arg6[%c0_470, %c8_471, %c1_472, %c0_473, %c0_474] : memref<1x9x4x16x16xf32, #tpu.memory_space<vmem>>, vector<1x1x1x16x16xf32>
    %689 = vector.shape_cast %688 : vector<1x1x1x16x16xf32> to vector<16x16xf32>
    %690 = vector.shape_cast %687 : vector<16x16xf32> to vector<1x1x1x16x16xf32>
    tpu.vector_store %arg6[%c0_470, %c8_471, %c1_472, %c0_473, %c0_474], %690 {strides = array<i32>} : memref<1x9x4x16x16xf32, #tpu.memory_space<vmem>>, vector<1x1x1x16x16xf32>,
    %691 = arith.addf %661, %669 : vector<16x16xf32>
    %cst_475 = arith.constant 0.000000e+00 : f32
    %692 = vector.broadcast %cst_475 : f32 to vector<16x16xf32>
    %693 = arith.maximumf %692, %691 : vector<16x16xf32>
    %694 = vector.broadcast %12 : f32 to vector<16x16xf32>
    %695 = arith.minimumf %694, %693 : vector<16x16xf32>
    %c0_476 = arith.constant 0 : index
    %c8_477 = arith.constant 8 : index
    %c2_478 = arith.constant 2 : index
    %c0_479 = arith.constant 0 : index
    %c0_480 = arith.constant 0 : index
    %696 = vector.load %arg6[%c0_476, %c8_477, %c2_478, %c0_479, %c0_480] : memref<1x9x4x16x16xf32, #tpu.memory_space<vmem>>, vector<1x1x1x16x16xf32>
    %697 = vector.shape_cast %696 : vector<1x1x1x16x16xf32> to vector<16x16xf32>
    %698 = vector.shape_cast %695 : vector<16x16xf32> to vector<1x1x1x16x16xf32>
    tpu.vector_store %arg6[%c0_476, %c8_477, %c2_478, %c0_479, %c0_480], %698 {strides = array<i32>} : memref<1x9x4x16x16xf32, #tpu.memory_space<vmem>>, vector<1x1x1x16x16xf32>,
    %699 = arith.addf %664, %674 : vector<16x16xf32>
    %cst_481 = arith.constant 0.000000e+00 : f32
    %700 = vector.broadcast %cst_481 : f32 to vector<16x16xf32>
    %701 = arith.maximumf %700, %699 : vector<16x16xf32>
    %702 = vector.broadcast %13 : f32 to vector<16x16xf32>
    %703 = arith.minimumf %702, %701 : vector<16x16xf32>
    %c0_482 = arith.constant 0 : index
    %c8_483 = arith.constant 8 : index
    %c3_484 = arith.constant 3 : index
    %c0_485 = arith.constant 0 : index
    %c0_486 = arith.constant 0 : index
    %704 = vector.load %arg6[%c0_482, %c8_483, %c3_484, %c0_485, %c0_486] : memref<1x9x4x16x16xf32, #tpu.memory_space<vmem>>, vector<1x1x1x16x16xf32>
    %705 = vector.shape_cast %704 : vector<1x1x1x16x16xf32> to vector<16x16xf32>
    %706 = vector.shape_cast %703 : vector<16x16xf32> to vector<1x1x1x16x16xf32>
    tpu.vector_store %arg6[%c0_482, %c8_483, %c3_484, %c0_485, %c0_486], %706 {strides = array<i32>} : memref<1x9x4x16x16xf32, #tpu.memory_space<vmem>>, vector<1x1x1x16x16xf32>,
    return
  }
  func.func @transform_0(%arg0: i32, %arg1: i32) -> i32 {
    %c0_i32 = arith.constant 0 : i32
    %c0_i32_0 = arith.constant 0 : i32
    return %c0_i32 : i32
  }
  func.func @transform_1(%arg0: i32, %arg1: i32) -> i32 {
    %c0_i32 = arith.constant 0 : i32
    %c0_i32_0 = arith.constant 0 : i32
    return %c0_i32 : i32
  }
  func.func @transform_2(%arg0: i32, %arg1: i32) -> (i32, i32, i32) {
    %c0_i32 = arith.constant 0 : i32
    %c0_i32_0 = arith.constant 0 : i32
    %c0_i32_1 = arith.constant 0 : i32
    %c0_i32_2 = arith.constant 0 : i32
    return %c0_i32, %c0_i32_0, %c0_i32_1 : i32, i32, i32
  }
  func.func @transform_3(%arg0: i32, %arg1: i32) -> (i32, i32, i32, i32, i32) {
    %c0_i32 = arith.constant 0 : i32
    %c0_i32_0 = arith.constant 0 : i32
    %c0_i32_1 = arith.constant 0 : i32
    %c0_i32_2 = arith.constant 0 : i32
    return %arg1, %arg0, %c0_i32, %c0_i32_0, %c0_i32_1 : i32, i32, i32, i32, i32
  }
  func.func @transform_4(%arg0: i32, %arg1: i32) -> (i32, i32, i32, i32, i32) {
    %c0_i32 = arith.constant 0 : i32
    %c0_i32_0 = arith.constant 0 : i32
    %c0_i32_1 = arith.constant 0 : i32
    %c0_i32_2 = arith.constant 0 : i32
    return %arg1, %arg0, %c0_i32, %c0_i32_0, %c0_i32_1 : i32, i32, i32, i32, i32
  }
}

</mosaic_0001>

<bundles_post_ra>
// kernel: _proposal_forward.1
= control target key start
LH: loop header
LB: loop body
LE: loop exit
PB: predicated region body
PF: predicated region fallthrough
CT: control target
= control target key end

     0   :  { %9 = vsyncpa [#allocation4], 0  ;;  %s2366_s0 = inlined_call_operand.vmem [shape: f32[4], index: 0, kind: input, shape index: {}]   ;;  %s2367_s1 = inlined_call_operand.vmem [shape: f32[36], index: 1, kind: input, shape index: {}]   ;;  %s2368_s2 = inlined_call_operand.vmem [shape: f32[2,16,16], index: 2, kind: input, shape index: {}]   ;;  %s2369_s3 = inlined_call_operand.vmem [shape: f32[2,9,4,16,16], index: 3, kind: input, shape index: {}]   ;;  %s2370_s4 = inlined_call_operand.hbm [shape: f32[2,9,4,16,16], index: 4, kind: output, shape index: {}]  }
   0x1   :  { %10 = vsyncpa [#allocation6], 0 }
   0x2   :  { %11 = vsyncpa [#allocation3], 0 }
   0x3   :  { %13 = vsyncpa [#allocation3 + $0x1], 0  ;;  %s1690_s15 = smov 0   ;;  %s1692_s16 = smov 0  }
   0x4   :  { %s1694_s17 = smov 0   ;;  %s1696_s18 = smov 0  }
   0x5   :  { %s1698_s19 = smov 0   ;;  %s1700_s20 = smov 0  }
   0x6 LB: > { %s1193_s21 = sadd.s32 4294967295, %s1659_s20   ;;  %s1194_s22 = sadd.s32 4294967294, %s1659_s20   ;;  %s1659_s20 = sphi %s1700_s20, %s19_s20   ;;  %s1655_s19 = sphi %s1698_s19, %s2378_s19   ;;  %s1651_s18 = sphi %s1696_s18, %s2377_s18   ;;  %s1647_s17 = sphi %s1694_s17, %s2376_s17   ;;  %s1643_s16 = sphi %s1692_s16, %s2375_s16   ;;  %s1639_s15 = sphi %s1690_s15, %s2374_s15  }
   0x7   : > { %s28_s23 = sadd.s32 1, %s1655_s19  ;;  %s131_s24 = sadd.s32 1, %s1647_s17 }
   0x8   : > { %p29_p0 = scmp.ge.s32.totalorder %s28_s23, 2  ;;  %p141_p1 = scmp.ne.s32.totalorder %s1647_s17, %s1643_s16 }
   0x9   : > { %p142_p2 = scmp.eq.s32.totalorder %s1193_s21, 1  ;;  %p147_p3 = scmp.ne.s32.totalorder %s1643_s16, %s1639_s15 }
   0xa   : > { %s2380_s23 = smov (%p29_p0, %s28_s23), 0  ;;  %p148_p5 = scmp.eq.s32.totalorder %s1194_s22, 1 }
   0xb   : > { %p1730_p4 = por %p142_p2, %p141_p1  ;;  %s126_s26 = ssub.s32 %s1655_s19, %s2380_s23 }
   0xc   : > { %p1195_p6 = scmp.ge.s32.totalorder %s1659_s20, 1  ;;  %p129_p7 = scmp.eq.s32.totalorder %s126_s26, 0 }
   0xd   : > { %p1737_p8 = por %p148_p5, %p147_p3  ;;  %p155_p9 = scmp.lt.s32.totalorder %s1659_s20, 3 }
   0xe   : > { %s1743_s28 = scalar_select %p129_p7, %s1647_s17, %s131_s24  }
   0xf   : > { %p156_p10 = pnand %p1195_p6, %p155_p9  ;;  %p1745_p11 = scmp.eq.s32.totalorder %s1193_s21, 0 }
  0x10   : > { %s167_s6 = sshll.u32 %s2366_s0, 4  ;;  %s177_s9 = sshll.u32 %s2367_s1, 4  ;;  %s168_s6 = int_to_ptr.vmem [resolvable:$true] %s167_s6  ;;  %s178_s9 = int_to_ptr.vmem [resolvable:$true] %s177_s9 }
  0x11   : > { %p1399_p12 = pneg %p156_p10  ;;  %s1661_s10 = smov [#allocation2]  }
  0x12   : > { %s1662_s11 = smov [#allocation5]   ;;  %207 = sbr.rel (%p156_p10) target bundleno = 177 (0xb1), region = 36 }
  0x13   : > { %p1400_p13 = pnand %p1745_p11, %p1399_p12 }
  0x15   : > { %1402 = dma.vmem_to_smem (!%p1400_p13), %s168_s6, 16, %s1661_s10, [#allocation4]  }
  0x16   : > { %1405 = dma.vmem_to_smem (!%p1400_p13), %s178_s9, 16, %s1662_s11, [#allocation6]  }
  0x17   : > { %1626 = dma.done.wait (%p1745_p11), [#allocation4], 16  }
  0x18   : > { %1628 = vsyncadd (%p1745_p11), [#allocation4], 4294967280 }
  0x19   : > { %1630 = dma.done.wait (%p1745_p11), [#allocation6], 16  }
  0x1a   : > { %1632 = vsyncadd (%p1745_p11), [#allocation6], 4294967280 }
  0x1b   : > { %219 = sfence }
  0x1c   : > { %p246_p0 = scmp.lt.s32.totalorder %s1651_s18, 1  ;;  %s1205_s12 = sshll.u32 %s1651_s18, 1  ;;  %v1781_v1 = vld [vmem:[%s2368_s2] sm:$0xff]  ;;  %v1795_v8 = vld [vmem:[%s2368_s2 + $0x8] sm:$0xff]  ;;  %v1810_v21 = vld [vmem:[%s2368_s2 + $0x10] sm:$0xff]  ;;  %vm327_vm0 = vcmask 130048  }
  0x1d   : > { %s265_s14 = sadd.s32 1, %s1205_s12  ;;  %s270_s24 = sld [smem:[#allocation5]]  ;;  %v1816_v22 = vld [vmem:[%s2368_s2 + $0x18] sm:$0xff] }
  0x1e   : > { %s247_s13 = scalar_select %p246_p0, %s1651_s18, 1 }
  0x1f   : > { %s1768_s22 = sld [smem:[#allocation2 + %s265_s14]] }
  0x20   : > { %s1387_s21 = smul.u32 576, %s247_s13  ;;  %s1209_s29 = sld [smem:[#allocation5 + $0x2]] }
  0x21   : > { %s1776_s6 = sld [smem:[#allocation2 + %s1205_s12]] }
  0x22   : > { %s1773_s5 = scalar_lea.vmem %s2369_s3, %s1387_s21  ;;  %s1785_s9 = sld [smem:[#allocation5 + $0x1]] }
  0x23   : > { %v1213_v0 = vld [vmem:[%s1773_s5 + $0x20] sm:$0xff]  ;;  %v1214_v4 = vld [vmem:[%s1773_s5 + $0x28] sm:$0xff]  ;;  %s1788_s10 = sld [smem:[#allocation5 + $0x3]]  ;;  %v1215_v7 = vld [vmem:[%s1773_s5 + $0x30] sm:$0xff]  ;;  %v294_v12 = vstv %s270_s24 }
  0x24   : > { %v283_v2 = vld [vmem:[%s1773_s5] sm:$0xff]  ;;  %v304_v3 = vmul.f32 1.442695, %v1213_v0  ;;  %v284_v5 = vld [vmem:[%s1773_s5 + $0x8] sm:$0xff]  ;;  %v306_v6 = vmul.f32 1.442695, %v1214_v4 }
  0x25   : > { %s1206_s11 = sadd.f32 -1.0, %s1768_s22  ;;  %v312_v9 = vmul.f32 1.442695, %v1215_v7  ;;  %v1216_v10 = vld [vmem:[%s1773_s5 + $0x38] sm:$0xff]  ;;  %v1231_v11 = vld [vmem:[%s1773_s5 + $0x60] sm:$0xff]  ;;  %v295_v15 = vmul.f32 %v294_v12, %v283_v2  ;;  %v296_v16 = vmul.f32 %v294_v12, %v284_v5  ;;  %v1211_v17 = vld [vmem:[%s1773_s5 + $0x10] sm:$0xff] }
  0x26   : > { %1467 = vpow2.f32 %v304_v3  ;;  %v314_v13 = vmul.f32 1.442695, %v1216_v10  ;;  %s1799_s14 = sld [smem:[#allocation5 + $0x4]]  ;;  %v275_v14 = vstv %s1209_s29  ;;  %v1232_v18 = vld [vmem:[%s1773_s5 + $0x68] sm:$0xff]  ;;  %v395_v23 = vmul.f32 1.442695, %v1231_v11 }
  0x27   : > { %1469 = vpow2.f32 %v306_v6  ;;  %s1802_s21 = sld [smem:[#allocation5 + $0x6]]  ;;  %v276_v19 = vadd.f32 %v275_v14, %v1781_v1  ;;  %v277_v20 = vadd.f32 %v275_v14, %v1795_v8  ;;  %v1233_v24 = vld [vmem:[%s1773_s5 + $0x70] sm:$0xff]  ;;  %v1819_v25 = vstv %s1206_s11  ;;  %v1212_v27 = vld [vmem:[%s1773_s5 + $0x18] sm:$0xff]  ;;  %v1227_v39 = vld [vmem:[%s1773_s5 + $0x40] sm:$0xff] }
  0x28   : > { %s1207_s26 = sadd.f32 -1.0, %s1776_s6  ;;  %1471 = vpow2.f32 %v312_v9  ;;  %v299_v26 = vstv %s1785_s9  ;;  %v397_v28 = vmul.f32 1.442695, %v1232_v18  ;;  %v1824_v32 = vmul.f32 1.442695, %v1233_v24  ;;  %v1234_v33 = vld [vmem:[%s1773_s5 + $0x78] sm:$0xff] }
  0x29   : > { %1473 = vpow2.f32 %v314_v13  ;;  %v297_v29 = vadd.f32 %v295_v15, %v276_v19  ;;  %v280_v30 = vstv %s1788_s10  ;;  %v300_v31 = vmul.f32 %v1211_v17, %v299_v26  ;;  %s242_s6 = sand.u32 1, %s1643_s16   ;;  %v1228_v44 = vld [vmem:[%s1773_s5 + $0x48] sm:$0xff]  ;;  %s1836_s7 = sld [smem:[#allocation5 + $0x7]] }
  0x2a   : > { %v298_v35 = vadd.f32 %v296_v16, %v277_v20  ;;  %v281_v36 = vadd.f32 %v1810_v21, %v280_v30  ;;  %v1828_v37 = vstv %s1207_s26  ;;  %v282_v38 = vadd.f32 %v1816_v22, %v280_v30  ;;  %s1844_s8 = smul.u32 576, %s242_s6  ;;  %s1846_s9 = sld [smem:[#allocation5 + $0x5]] }
  0x2b   : > { %v301_v42 = vmul.f32 %v1212_v27, %v299_v26  ;;  %1475 = vpow2.f32 %v395_v23  ;;  %v1838_v48 = vmul.f32 1.442695, %v1234_v33  ;;  %s1848_s10 = sld [smem:[#allocation5 + $0xa]] }
  0x2c   : > { %v1468_v34 = vpop.eup %1467  ;;  %v385_v43 = vstv %s1799_s14  ;;  %v302_v46 = vadd.f32 %v300_v31, %v281_v36  ;;  %1477 = vpow2.f32 %v397_v28  ;;  %s1854_s11 = sld [smem:[#allocation5 + $0x8]]  ;;  %s1857_s12 = scalar_lea.vmem [#allocation7], %s1844_s8 }
  0x2d   : > { %v1470_v40 = vpop.eup %1469  ;;  %v308_v41 = vmul.f32 %v1468_v34, %v294_v12  ;;  %v365_v47 = vstv %s1802_s21  ;;  %v386_v52 = vmul.f32 %v1227_v39, %v385_v43  ;;  %v387_v57 = vmul.f32 %v1228_v44, %v385_v43  ;;  %s1867_s13 = sld [smem:[#allocation5 + $0x9]]  ;;  %v1230_v39 = vld [vmem:[%s1773_s5 + $0x58] sm:$0xff] }
  0x2e   : > { %v309_v45 = vmul.f32 %v1470_v40, %v294_v12  ;;  %v1472_v49 = vpop.eup %1471  ;;  %v366_v51 = vadd.f32 %v365_v47, %v1781_v1  ;;  %v367_v53 = vadd.f32 %v365_v47, %v1795_v8  ;;  %v303_v59 = vadd.f32 %v301_v42, %v282_v38  ;;  %s1874_s14 = sld [smem:[#allocation5 + $0xb]] }
  0x2f   : > { %v310_v50 = vmul.f32 0.5, %v308_v41  ;;  %v1474_v54 = vpop.eup %1473  ;;  %v316_v56 = vmul.f32 %v1472_v49, %v299_v26  ;;  %v370_v23 = vstv %s1836_s7  ;;  %1479 = vpow2.f32 %v1824_v32  ;;  %v1247_v32 = vld [vmem:[%s1773_s5 + $0x80] sm:$0xff]  ;;  %s1890_s21 = sld [smem:[#allocation5 + $0xe]] }
  0x30   : > { %v311_v55 = vmul.f32 0.5, %v309_v45  ;;  %v317_v60 = vmul.f32 %v1474_v54, %v299_v26  ;;  %v388_v2 = vadd.f32 %v386_v52, %v366_v51  ;;  %v389_v7 = vadd.f32 %v387_v57, %v367_v53  ;;  %s1907_s22 = sld [smem:[#allocation5 + $0xc]] }
  0x31   : > { %v320_v58 = vsub.f32 %v297_v29, %v310_v50  ;;  %v340_v61 = vadd.f32 %v310_v50, %v297_v29  ;;  %v318_v63 = vmul.f32 0.5, %v316_v56  ;;  %v1476_v3 = vpop.eup %1475  ;;  %v1229_v29 = vld [vmem:[%s1773_s5 + $0x50] sm:$0xff]  ;;  %v390_v33 = vstv %s1846_s9  ;;  %v1252_v56 = vld [vmem:[%s1773_s5 + $0xa8] sm:$0xff]  ;;  %s1942_s24 = sld [smem:[#allocation5 + $0xf]] }
  0x32   : > { %v321_v62 = vsub.f32 %v298_v35, %v311_v55  ;;  %v341_v0 = vadd.f32 %v311_v55, %v298_v35  ;;  %v319_v5 = vmul.f32 0.5, %v317_v60  ;;  %v1478_v17 = vpop.eup %1477  ;;  %v399_v27 = vmul.f32 %v1476_v3, %v385_v43  ;;  %v1248_v55 = vld [vmem:[%s1773_s5 + $0x88] sm:$0xff]  ;;  %s1946_s26 = sld [smem:[#allocation5 + $0xd]] }
  0x33   : > { %v322_v4 = vmax.f32 %v320_v58, 0.0  ;;  %v342_v6 = vmax.f32 %v340_v61, 0.0  ;;  %v330_v10 = vsub.f32 %v302_v46, %v318_v63  ;;  %v349_v12 = vadd.f32 %v318_v63, %v302_v46  ;;  %v1251_v46 = vld [vmem:[%s1773_s5 + $0xa0] sm:$0xff]  ;;  %s1962_s30 = sld [smem:[#allocation5 + $0x10]] }
  0x34   : > { %v323_v9 = vmax.f32 %v321_v62, 0.0  ;;  %v343_v11 = vmax.f32 %v341_v0, 0.0  ;;  %v331_v14 = vsub.f32 %v303_v59, %v319_v5  ;;  %v350_v16 = vadd.f32 %v319_v5, %v303_v59  ;;  %s1965_s29 = sld [smem:[#allocation5 + $0x12]] }
  0x35   : > { %v325_v13 = vmin.f32 %v1819_v25, %v322_v4  ;;  %v344_v15 = vmin.f32 %v1819_v25, %v342_v6  ;;  %v332_v19 = vmax.f32 %v330_v10, 0.0  ;;  %v351_v20 = vmax.f32 %v349_v12, 0.0  ;;  %v1249_v6 = vld [vmem:[%s1773_s5 + $0x90] sm:$0xff]  ;;  %s1987_s7 = sld [smem:[#allocation5 + $0x13]] }
  0x36   : > { %v326_v18 = vmin.f32 %v1819_v25, %v323_v9  ;;  %v333_v24 = vmax.f32 %v331_v14, 0.0  ;;  %v352_v26 = vmax.f32 %v350_v16, 0.0  ;;  %v400_v28 = vmul.f32 %v1478_v17, %v385_v43  ;;  %v1254_v14 = vld [vmem:[%s1773_s5 + $0xb8] sm:$0xff]  ;;  %s1999_s8 = sld [smem:[#allocation5 + $0x11]] }
  0x37   : > { %328 = vst.msk [vmem:[%s1857_s12] sm:$0xff] %vm327_vm0, %v325_v13  ;;  %v335_v30 = vmin.f32 %v1828_v37, %v332_v19  ;;  %v345_v31 = vmin.f32 %v1819_v25, %v343_v11  ;;  %v353_v35 = vmin.f32 %v1828_v37, %v351_v20  ;;  %v401_v36 = vmul.f32 0.5, %v399_v27  ;;  %s2016_s9 = sld [smem:[#allocation5 + $0x16]] }
  0x38   : > { %329 = vst.msk [vmem:[%s1857_s12 + $0x8] sm:$0xff] %vm327_vm0, %v326_v18  ;;  %v336_v34 = vmin.f32 %v1828_v37, %v333_v24  ;;  %v402_v38 = vmul.f32 0.5, %v400_v28  ;;  %v354_v40 = vmin.f32 %v1828_v37, %v352_v26  ;;  %v371_v41 = vadd.f32 %v1810_v21, %v370_v23  ;;  %v1250_v24 = vld [vmem:[%s1773_s5 + $0x98] sm:$0xff] }
  0x39   : > { %1219 = vst.msk [vmem:[%s1857_s12 + $0x20] sm:$0xff] %vm327_vm0, %v344_v15  ;;  %v391_v42 = vmul.f32 %v1229_v29, %v390_v33  ;;  %v411_v43 = vsub.f32 %v388_v2, %v401_v36  ;;  %1481 = vpow2.f32 %v1838_v48  ;;  %v429_v45 = vadd.f32 %v401_v36, %v388_v2  ;;  %v1480_v2 = vpop.eup %1479 }
  0x3a   : > { %1217 = vst.msk [vmem:[%s1857_s12 + $0x10] sm:$0xff] %vm327_vm0, %v335_v30  ;;  %v412_v44 = vsub.f32 %v389_v7, %v402_v38  ;;  %v372_v47 = vadd.f32 %v1816_v22, %v370_v23  ;;  %v392_v49 = vmul.f32 %v1230_v39, %v390_v33  ;;  %v430_v50 = vadd.f32 %v402_v38, %v389_v7  ;;  %v1253_v7 = vld [vmem:[%s1773_s5 + $0xb0] sm:$0xff] }
  0x3b   : > { %1218 = vst.msk [vmem:[%s1857_s12 + $0x18] sm:$0xff] %vm327_vm0, %v336_v34  ;;  %v454_v51 = vstv %s1848_s10  ;;  %v413_v52 = vmax.f32 %v411_v43, 0.0  ;;  %v431_v48 = vmax.f32 %v429_v45, 0.0  ;;  %v474_v58 = vstv %s1854_s11  ;;  %v1271_v34 = vld [vmem:[%s1773_s5 + $0xe0] sm:$0xff]  ;;  %s2026_s10 = sld [smem:[#allocation5 + $0x14]] }
  0x3c   : > { %1220 = vst.msk [vmem:[%s1857_s12 + $0x28] sm:$0xff] %vm327_vm0, %v345_v31  ;;  %v414_v53 = vmax.f32 %v412_v44, 0.0  ;;  %v455_v54 = vadd.f32 %v454_v51, %v1781_v1  ;;  %v432_v57 = vmax.f32 %v430_v50, 0.0  ;;  %v484_v59 = vmul.f32 1.442695, %v1251_v46  ;;  %v1267_v44 = vld [vmem:[%s1773_s5 + $0xc0] sm:$0xff] }
  0x3d   : > { %1221 = vst.msk [vmem:[%s1857_s12 + $0x30] sm:$0xff] %vm327_vm0, %v353_v35  ;;  %v456_v60 = vadd.f32 %v454_v51, %v1795_v8  ;;  %v415_v61 = vmin.f32 %v1819_v25, %v413_v52  ;;  %v433_v63 = vmin.f32 %v1819_v25, %v431_v48  ;;  %v475_v0 = vmul.f32 %v1247_v32, %v474_v58  ;;  %v1272_v48 = vld [vmem:[%s1773_s5 + $0xe8] sm:$0xff]  ;;  %s2057_s11 = sld [smem:[#allocation5 + $0x17]] }
  0x3e   : > { %1222 = vst.msk [vmem:[%s1857_s12 + $0x38] sm:$0xff] %vm327_vm0, %v354_v40  ;;  %v416_v62 = vmin.f32 %v1819_v25, %v414_v53  ;;  %v434_v3 = vmin.f32 %v1819_v25, %v432_v57  ;;  %1483 = vpow2.f32 %v484_v59  ;;  %v476_v4 = vmul.f32 %v1248_v55, %v474_v58 }
  0x3f   : > { %v486_v5 = vmul.f32 1.442695, %v1252_v56  ;;  %v1482_v9 = vpop.eup %1481  ;;  %1235 = vst.msk [vmem:[%s1857_s12 + $0x40] sm:$0xff] %vm327_vm0, %v415_v61  ;;  %v393_v10 = vadd.f32 %v391_v42, %v371_v41  ;;  %v407_v11 = vmul.f32 %v1480_v2, %v390_v33  ;;  %v459_v12 = vstv %s1874_s14  ;;  %s2075_s14 = sld [smem:[#allocation5 + $0x18]] }
  0x40   : > { %v1913_v13 = vstv %s1867_s13  ;;  %1236 = vst.msk [vmem:[%s1857_s12 + $0x48] sm:$0xff] %vm327_vm0, %v416_v62  ;;  %v394_v15 = vadd.f32 %v392_v49, %v372_v47  ;;  %v408_v16 = vmul.f32 %v1482_v9, %v390_v33  ;;  %v477_v17 = vadd.f32 %v475_v0, %v455_v54  ;;  %v1268_v9 = vld [vmem:[%s1773_s5 + $0xc8] sm:$0xff]  ;;  %s2062_s13 = sld [smem:[#allocation5 + $0x15]] }
  0x41   : > { %1485 = vpow2.f32 %v486_v5  ;;  %v409_v18 = vmul.f32 0.5, %v407_v11  ;;  %1239 = vst.msk [vmem:[%s1857_s12 + $0x60] sm:$0xff] %vm327_vm0, %v433_v63  ;;  %v1920_v19 = vadd.f32 %v476_v4, %v456_v60  ;;  %v460_v20 = vadd.f32 %v1810_v21, %v459_v12 }
  0x42   : > { %v492_v23 = vmul.f32 1.442695, %v1253_v7  ;;  %v410_v26 = vmul.f32 0.5, %v408_v16  ;;  %1240 = vst.msk [vmem:[%s1857_s12 + $0x68] sm:$0xff] %vm327_vm0, %v434_v3  ;;  %v480_v27 = vmul.f32 %v1249_v6, %v1913_v13  ;;  %v494_v28 = vmul.f32 1.442695, %v1254_v14 }
  0x43   : > { %v543_v29 = vstv %s1890_s21  ;;  %v420_v30 = vsub.f32 %v393_v10, %v409_v18  ;;  %v438_v31 = vadd.f32 %v409_v18, %v393_v10  ;;  %v461_v33 = vadd.f32 %v1816_v22, %v459_v12  ;;  %s2081_s21 = sld [smem:[#allocation5 + $0x1a]] }
  0x44   : > { %1487 = vpow2.f32 %v492_v23  ;;  %v1484_v35 = vpop.eup %1483  ;;  %v421_v36 = vsub.f32 %v394_v15, %v410_v26  ;;  %v439_v38 = vadd.f32 %v410_v26, %v394_v15  ;;  %v481_v39 = vmul.f32 %v1250_v24, %v1913_v13 }
  0x45   : > { %1489 = vpow2.f32 %v494_v28  ;;  %v422_v40 = vmax.f32 %v420_v30, 0.0  ;;  %v440_v41 = vmax.f32 %v438_v31, 0.0  ;;  %v488_v42 = vmul.f32 %v1484_v35, %v474_v58 }
  0x46   : > { %v544_v43 = vadd.f32 %v543_v29, %v1781_v1  ;;  %v423_v46 = vmax.f32 %v421_v36, 0.0  ;;  %v441_v47 = vmax.f32 %v439_v38, 0.0  ;;  %v1934_v49 = vstv %s1907_s22  ;;  %s2097_s22 = sld [smem:[#allocation5 + $0x1b]] }
  0x47   : > { %v1486_v45 = vpop.eup %1485  ;;  %v573_v50 = vmul.f32 1.442695, %v1271_v34  ;;  %v424_v51 = vmin.f32 %v1828_v37, %v422_v40  ;;  %v442_v32 = vmin.f32 %v1828_v37, %v440_v41  ;;  %v490_v52 = vmul.f32 0.5, %v488_v42 }
  0x48   : > { %v489_v53 = vmul.f32 %v1486_v45, %v474_v58  ;;  %v425_v54 = vmin.f32 %v1828_v37, %v423_v46  ;;  %v443_v55 = vmin.f32 %v1828_v37, %v441_v47  ;;  %v564_v56 = vmul.f32 %v1267_v44, %v1934_v49  ;;  %v1274_v46 = vld [vmem:[%s1773_s5 + $0xf8] sm:$0xff] }
  0x49   : > { %1491 = vpow2.f32 %v573_v50  ;;  %1237 = vst.msk [vmem:[%s1857_s12 + $0x50] sm:$0xff] %vm327_vm0, %v424_v51  ;;  %v500_v59 = vsub.f32 %v477_v17, %v490_v52  ;;  %v482_v61 = vadd.f32 %v480_v27, %v460_v20  ;;  %v518_v58 = vadd.f32 %v490_v52, %v477_v17  ;;  %v1270_v52 = vld [vmem:[%s1773_s5 + $0xd8] sm:$0xff] }
  0x4a   : > { %v1488_v57 = vpop.eup %1487  ;;  %v491_v60 = vmul.f32 0.5, %v489_v53  ;;  %1238 = vst.msk [vmem:[%s1857_s12 + $0x58] sm:$0xff] %vm327_vm0, %v425_v54  ;;  %v483_v0 = vadd.f32 %v481_v39, %v461_v33  ;;  %v545_v2 = vadd.f32 %v543_v29, %v1795_v8  ;;  %v575_v3 = vmul.f32 1.442695, %v1272_v48  ;;  %v1273_v29 = vld [vmem:[%s1773_s5 + $0xf0] sm:$0xff]  ;;  %v1291_v53 = vld [vmem:[%s1773_s5 + $0x120] sm:$0xff] }
  0x4b   : > { %v1490_v62 = vpop.eup %1489  ;;  %v496_v63 = vmul.f32 %v1488_v57, %v1913_v13  ;;  %1241 = vst.msk [vmem:[%s1857_s12 + $0x70] sm:$0xff] %vm327_vm0, %v442_v32  ;;  %v502_v4 = vmax.f32 %v500_v59, 0.0  ;;  %v520_v7 = vmax.f32 %v518_v58, 0.0  ;;  %v566_v12 = vadd.f32 %v564_v56, %v544_v43  ;;  %v1269_v39 = vld [vmem:[%s1773_s5 + $0xd0] sm:$0xff] }
  0x4c   : > { %v501_v5 = vsub.f32 %v1920_v19, %v491_v60  ;;  %v497_v6 = vmul.f32 %v1490_v62, %v1913_v13  ;;  %1242 = vst.msk [vmem:[%s1857_s12 + $0x78] sm:$0xff] %vm327_vm0, %v443_v55  ;;  %v519_v11 = vadd.f32 %v491_v60, %v1920_v19  ;;  %1493 = vpow2.f32 %v575_v3  ;;  %v1287_v60 = vld [vmem:[%s1773_s5 + $0x100] sm:$0xff] }
  0x4d   : > { %v498_v10 = vmul.f32 0.5, %v496_v63  ;;  %v504_v14 = vmin.f32 %v1819_v25, %v502_v4  ;;  %v522_v17 = vmin.f32 %v1819_v25, %v520_v7  ;;  %v565_v19 = vmul.f32 %v1268_v9, %v1934_v49 }
  0x4e   : > { %v503_v15 = vmax.f32 %v501_v5, 0.0  ;;  %v499_v16 = vmul.f32 0.5, %v497_v6  ;;  %v521_v20 = vmax.f32 %v519_v11, 0.0  ;;  %v548_v34 = vstv %s1942_s24  ;;  %v1292_v5 = vld [vmem:[%s1773_s5 + $0x128] sm:$0xff]  ;;  %s2107_s24 = sld [smem:[#allocation5 + $0x19]] }
  0x4f   : > { %v1492_v13 = vpop.eup %1491  ;;  %v509_v18 = vsub.f32 %v482_v61, %v498_v10  ;;  %v527_v23 = vadd.f32 %v498_v10, %v482_v61  ;;  %1255 = vst.msk [vmem:[%s1857_s12 + $0x80] sm:$0xff] %vm327_vm0, %v504_v14  ;;  %v1980_v40 = vstv %s1946_s26  ;;  %v567_v44 = vadd.f32 %v565_v19, %v545_v2  ;;  %s2132_s26 = sld [smem:[#allocation5 + $0x1c]] }
  0x50   : > { %v505_v24 = vmin.f32 %v1819_v25, %v503_v15  ;;  %v510_v26 = vsub.f32 %v483_v0, %v499_v16  ;;  %v528_v27 = vadd.f32 %v499_v16, %v483_v0  ;;  %v577_v28 = vmul.f32 %v1492_v13, %v1934_v49  ;;  %1259 = vst.msk [vmem:[%s1857_s12 + $0xa0] sm:$0xff] %vm327_vm0, %v522_v17  ;;  %v1288_v0 = vld [vmem:[%s1773_s5 + $0x108] sm:$0xff]  ;;  %v1293_v15 = vld [vmem:[%s1773_s5 + $0x130] sm:$0xff] }
  0x51   : > { %v511_v30 = vmax.f32 %v509_v18, 0.0  ;;  %v523_v31 = vmin.f32 %v1819_v25, %v521_v20  ;;  %v529_v33 = vmax.f32 %v527_v23, 0.0  ;;  %v581_v45 = vmul.f32 1.442695, %v1273_v29  ;;  %v1289_v23 = vld [vmem:[%s1773_s5 + $0x110] sm:$0xff] }
  0x52   : > { %1256 = vst.msk [vmem:[%s1857_s12 + $0x88] sm:$0xff] %vm327_vm0, %v505_v24  ;;  %v512_v35 = vmax.f32 %v510_v26, 0.0  ;;  %v530_v36 = vmax.f32 %v528_v27, 0.0  ;;  %v579_v38 = vmul.f32 0.5, %v577_v28  ;;  %v1494_v41 = vpop.eup %1493  ;;  %v549_v48 = vadd.f32 %v1810_v21, %v548_v34  ;;  %v1294_v28 = vld [vmem:[%s1773_s5 + $0x138] sm:$0xff] }
  0x53   : > { %v513_v42 = vmin.f32 %v1828_v37, %v511_v30  ;;  %1260 = vst.msk [vmem:[%s1857_s12 + $0xa8] sm:$0xff] %vm327_vm0, %v523_v31  ;;  %v531_v43 = vmin.f32 %v1828_v37, %v529_v33  ;;  %v578_v32 = vmul.f32 %v1494_v41, %v1934_v49  ;;  %v569_v54 = vmul.f32 %v1269_v39, %v1980_v40  ;;  %v1290_v39 = vld [vmem:[%s1773_s5 + $0x118] sm:$0xff] }
  0x54   : > { %v514_v47 = vmin.f32 %v1828_v37, %v512_v35  ;;  %v532_v50 = vmin.f32 %v1828_v37, %v530_v36  ;;  %v589_v51 = vsub.f32 %v566_v12, %v579_v38  ;;  %1495 = vpow2.f32 %v581_v45 }
  0x55   : > { %1257 = vst.msk [vmem:[%s1857_s12 + $0x90] sm:$0xff] %vm327_vm0, %v513_v42  ;;  %v550_v55 = vadd.f32 %v1816_v22, %v548_v34  ;;  %v580_v56 = vmul.f32 0.5, %v578_v32  ;;  %v583_v57 = vmul.f32 1.442695, %v1274_v46  ;;  %v607_v59 = vadd.f32 %v579_v38, %v566_v12 }
  0x56   : > { %1258 = vst.msk [vmem:[%s1857_s12 + $0x98] sm:$0xff] %vm327_vm0, %v514_v47  ;;  %v591_v49 = vmax.f32 %v589_v51, 0.0  ;;  %v570_v61 = vmul.f32 %v1270_v52, %v1980_v40  ;;  %v632_v58 = vstv %s1965_s29  ;;  %v2009_v62 = vstv %s1962_s30  ;;  %v1311_v51 = vld [vmem:[%s1773_s5 + $0x160] sm:$0xff]  ;;  %s2137_s30 = sld [smem:[#allocation5 + $0x1e]] }
  0x57   : > { %1261 = vst.msk [vmem:[%s1857_s12 + $0xb0] sm:$0xff] %vm327_vm0, %v531_v43  ;;  %v662_v63 = vmul.f32 1.442695, %v1291_v53  ;;  %v590_v3 = vsub.f32 %v567_v44, %v580_v56  ;;  %1497 = vpow2.f32 %v583_v57  ;;  %v609_v4 = vmax.f32 %v607_v59, 0.0  ;;  %s2160_s29 = sld [smem:[#allocation5 + $0x1d]] }
  0x58   : > { %1262 = vst.msk [vmem:[%s1857_s12 + $0xb8] sm:$0xff] %vm327_vm0, %v532_v50  ;;  %v593_v2 = vmin.f32 %v1819_v25, %v591_v49  ;;  %v608_v6 = vadd.f32 %v580_v56, %v567_v44  ;;  %v633_v7 = vadd.f32 %v632_v58, %v1781_v1  ;;  %v653_v9 = vmul.f32 %v1287_v60, %v2009_v62 }
  0x59   : > { %1499 = vpow2.f32 %v662_v63  ;;  %v592_v10 = vmax.f32 %v590_v3, 0.0  ;;  %v611_v11 = vmin.f32 %v1819_v25, %v609_v4  ;;  %v634_v12 = vadd.f32 %v632_v58, %v1795_v8 }
  0x5a   : > { %1275 = vst.msk [vmem:[%s1857_s12 + $0xc0] sm:$0xff] %vm327_vm0, %v593_v2  ;;  %v654_v14 = vmul.f32 %v1288_v0, %v2009_v62  ;;  %v1496_v16 = vpop.eup %1495  ;;  %v571_v17 = vadd.f32 %v569_v54, %v549_v48  ;;  %v610_v13 = vmax.f32 %v608_v6, 0.0  ;;  %v664_v18 = vmul.f32 1.442695, %v1292_v5 }
  0x5b   : > { %v637_v20 = vstv %s1987_s7  ;;  %v594_v19 = vmin.f32 %v1819_v25, %v592_v10  ;;  %v585_v24 = vmul.f32 %v1496_v16, %v1980_v40  ;;  %v572_v26 = vadd.f32 %v570_v61, %v550_v55  ;;  %1279 = vst.msk [vmem:[%s1857_s12 + $0xe0] sm:$0xff] %vm327_vm0, %v611_v11  ;;  %v1307_v55 = vld [vmem:[%s1773_s5 + $0x140] sm:$0xff]  ;;  %s2167_s7 = sld [smem:[#allocation5 + $0x1f]] }
  0x5c   : > { %v638_v27 = vadd.f32 %v1810_v21, %v637_v20  ;;  %v612_v29 = vmin.f32 %v1819_v25, %v610_v13  ;;  %1501 = vpow2.f32 %v664_v18  ;;  %v657_v30 = vstv %s1999_s8 }
  0x5d   : > { %v670_v31 = vmul.f32 1.442695, %v1293_v15  ;;  %v1498_v33 = vpop.eup %1497  ;;  %1276 = vst.msk [vmem:[%s1857_s12 + $0xc8] sm:$0xff] %vm327_vm0, %v594_v19  ;;  %v587_v34 = vmul.f32 0.5, %v585_v24  ;;  %v655_v35 = vadd.f32 %v653_v9, %v633_v7  ;;  %v656_v36 = vadd.f32 %v654_v14, %v634_v12  ;;  %v1312_v12 = vld [vmem:[%s1773_s5 + $0x168] sm:$0xff] }
  0x5e   : > { %v658_v38 = vmul.f32 %v1289_v23, %v657_v30  ;;  %v586_v42 = vmul.f32 %v1498_v33, %v1980_v40  ;;  %1280 = vst.msk [vmem:[%s1857_s12 + $0xe8] sm:$0xff] %vm327_vm0, %v612_v29  ;;  %v639_v43 = vadd.f32 %v1816_v22, %v637_v20  ;;  %v672_v44 = vmul.f32 1.442695, %v1294_v28  ;;  %v1308_v19 = vld [vmem:[%s1773_s5 + $0x148] sm:$0xff] }
  0x5f   : > { %v1500_v41 = vpop.eup %1499  ;;  %1503 = vpow2.f32 %v670_v31  ;;  %v598_v45 = vsub.f32 %v571_v17, %v587_v34  ;;  %v616_v46 = vadd.f32 %v587_v34, %v571_v17  ;;  %v721_v50 = vstv %s2016_s9  ;;  %s1086_s9 = sshll.u32 %s1857_s12, 4  ;;  %s1087_s9 = int_to_ptr.vmem [resolvable:$true] %s1086_s9 }
  0x60   : > { %v666_v47 = vmul.f32 %v1500_v41, %v2009_v62  ;;  %v588_v32 = vmul.f32 0.5, %v586_v42  ;;  %v660_v52 = vadd.f32 %v658_v38, %v638_v27  ;;  %v659_v53 = vmul.f32 %v1290_v39, %v657_v30 }
  0x61   : > { %1505 = vpow2.f32 %v672_v44  ;;  %v600_v48 = vmax.f32 %v598_v45, 0.0  ;;  %v618_v40 = vmax.f32 %v616_v46, 0.0  ;;  %v2050_v49 = vstv %s2026_s10  ;;  %v1313_v44 = vld [vmem:[%s1773_s5 + $0x170] sm:$0xff] }
  0x62   : > { %v668_v54 = vmul.f32 0.5, %v666_v47  ;;  %v1502_v56 = vpop.eup %1501  ;;  %v599_v57 = vsub.f32 %v572_v26, %v588_v32  ;;  %v617_v59 = vadd.f32 %v588_v32, %v572_v26  ;;  %v722_v60 = vadd.f32 %v721_v50, %v1781_v1  ;;  %v1314_v32 = vld [vmem:[%s1773_s5 + $0x178] sm:$0xff] }
  0x63   : > { %v751_v61 = vmul.f32 1.442695, %v1311_v51  ;;  %v602_v58 = vmin.f32 %v1828_v37, %v600_v48  ;;  %v620_v63 = vmin.f32 %v1828_v37, %v618_v40  ;;  %v667_v2 = vmul.f32 %v1502_v56, %v2009_v62  ;;  %v1309_v51 = vld [vmem:[%s1773_s5 + $0x150] sm:$0xff] }
  0x64   : > { %v678_v0 = vsub.f32 %v655_v35, %v668_v54  ;;  %v601_v4 = vmax.f32 %v599_v57, 0.0  ;;  %v619_v5 = vmax.f32 %v617_v59, 0.0  ;;  %v696_v6 = vadd.f32 %v668_v54, %v655_v35  ;;  %v1310_v59 = vld [vmem:[%s1773_s5 + $0x158] sm:$0xff] }
  0x65   : > { %v1504_v3 = vpop.eup %1503  ;;  %v742_v7 = vmul.f32 %v1307_v55, %v2050_v49  ;;  %1277 = vst.msk [vmem:[%s1857_s12 + $0xd0] sm:$0xff] %vm327_vm0, %v602_v58  ;;  %v669_v10 = vmul.f32 0.5, %v667_v2  ;;  %1507 = vpow2.f32 %v751_v61  ;;  %v661_v16 = vadd.f32 %v659_v53, %v639_v43 }
  0x66   : > { %v680_v9 = vmax.f32 %v678_v0, 0.0  ;;  %v674_v11 = vmul.f32 %v1504_v3, %v657_v30  ;;  %v603_v14 = vmin.f32 %v1828_v37, %v601_v4  ;;  %1281 = vst.msk [vmem:[%s1857_s12 + $0xf0] sm:$0xff] %vm327_vm0, %v620_v63  ;;  %v621_v15 = vmin.f32 %v1828_v37, %v619_v5  ;;  %v1331_v0 = vld [vmem:[%s1773_s5 + $0x1a0] sm:$0xff] }
  0x67   : > { %v1506_v62 = vpop.eup %1505  ;;  %v698_v17 = vmax.f32 %v696_v6, 0.0  ;;  %v679_v18 = vsub.f32 %v656_v36, %v669_v10  ;;  %v697_v26 = vadd.f32 %v669_v10, %v656_v36  ;;  %v744_v27 = vadd.f32 %v742_v7, %v722_v60  ;;  %v1327_v10 = vld [vmem:[%s1773_s5 + $0x180] sm:$0xff] }
  0x68   : > { %v682_v13 = vmin.f32 %v1819_v25, %v680_v9  ;;  %v676_v20 = vmul.f32 0.5, %v674_v11  ;;  %v675_v23 = vmul.f32 %v1506_v62, %v657_v30  ;;  %1278 = vst.msk [vmem:[%s1857_s12 + $0xd8] sm:$0xff] %vm327_vm0, %v603_v14  ;;  %v753_v28 = vmul.f32 1.442695, %v1312_v12 }
  0x69   : > { %v700_v24 = vmin.f32 %v1819_v25, %v698_v17  ;;  %1282 = vst.msk [vmem:[%s1857_s12 + $0xf8] sm:$0xff] %vm327_vm0, %v621_v15  ;;  %v681_v29 = vmax.f32 %v679_v18, 0.0  ;;  %v699_v30 = vmax.f32 %v697_v26, 0.0  ;;  %v723_v35 = vadd.f32 %v721_v50, %v1795_v8  ;;  %v1328_v15 = vld [vmem:[%s1773_s5 + $0x188] sm:$0xff] }
  0x6a   : > { %v687_v31 = vsub.f32 %v660_v52, %v676_v20  ;;  %v677_v33 = vmul.f32 0.5, %v675_v23  ;;  %v705_v34 = vadd.f32 %v676_v20, %v660_v52  ;;  %1295 = vst.msk [vmem:[%s1857_s12 + $0x100] sm:$0xff] %vm327_vm0, %v682_v13  ;;  %v743_v36 = vmul.f32 %v1308_v19, %v2050_v49  ;;  %v1332_v18 = vld [vmem:[%s1773_s5 + $0x1a8] sm:$0xff] }
  0x6b   : > { %1509 = vpow2.f32 %v753_v28  ;;  %v1508_v38 = vpop.eup %1507  ;;  %v683_v39 = vmin.f32 %v1819_v25, %v681_v29  ;;  %1299 = vst.msk [vmem:[%s1857_s12 + $0x120] sm:$0xff] %vm327_vm0, %v700_v24  ;;  %v701_v45 = vmin.f32 %v1819_v25, %v699_v30  ;;  %v726_v50 = vstv %s2057_s11  ;;  %v1333_v28 = vld [vmem:[%s1773_s5 + $0x1b0] sm:$0xff]  ;;  %s1071_s11 = scalar_lea.sflag [#allocation3], %s242_s6 }
  0x6c   : > { %v689_v41 = vmax.f32 %v687_v31, 0.0  ;;  %v688_v42 = vsub.f32 %v661_v16, %v677_v33  ;;  %v707_v43 = vmax.f32 %v705_v34, 0.0  ;;  %v706_v46 = vadd.f32 %v677_v33, %v661_v16 }
  0x6d   : > { %v755_v47 = vmul.f32 %v1508_v38, %v2050_v49  ;;  %1296 = vst.msk [vmem:[%s1857_s12 + $0x108] sm:$0xff] %vm327_vm0, %v683_v39  ;;  %v746_v40 = vstv %s2062_s13  ;;  %v745_v56 = vadd.f32 %v743_v36, %v723_v35  ;;  %v759_v57 = vmul.f32 1.442695, %v1313_v44  ;;  %v1329_v38 = vld [vmem:[%s1773_s5 + $0x190] sm:$0xff]  ;;  %v1334_v44 = vld [vmem:[%s1773_s5 + $0x1b8] sm:$0xff]  ;;  %s2203_s13 = sld [smem:[#allocation5 + $0x22]] }
  0x6e   : > { %v691_v52 = vmin.f32 %v1828_v37, %v689_v41  ;;  %v690_v53 = vmax.f32 %v688_v42, 0.0  ;;  %v709_v48 = vmin.f32 %v1828_v37, %v707_v43  ;;  %1300 = vst.msk [vmem:[%s1857_s12 + $0x128] sm:$0xff] %vm327_vm0, %v701_v45  ;;  %v708_v54 = vmax.f32 %v706_v46, 0.0 }
  0x6f   : > { %v757_v55 = vmul.f32 0.5, %v755_v47  ;;  %v727_v61 = vadd.f32 %v1810_v21, %v726_v50  ;;  %v747_v58 = vmul.f32 %v1309_v51, %v746_v40  ;;  %v761_v63 = vmul.f32 1.442695, %v1314_v32  ;;  %v1330_v51 = vld [vmem:[%s1773_s5 + $0x198] sm:$0xff] }
  0x70   : > { %1297 = vst.msk [vmem:[%s1857_s12 + $0x110] sm:$0xff] %vm327_vm0, %v691_v52  ;;  %v692_v60 = vmin.f32 %v1828_v37, %v690_v53  ;;  %v710_v3 = vmin.f32 %v1828_v37, %v708_v54  ;;  %1511 = vpow2.f32 %v759_v57  ;;  %v728_v5 = vadd.f32 %v1816_v22, %v726_v50 }
  0x71   : > { %v1510_v2 = vpop.eup %1509  ;;  %1301 = vst.msk [vmem:[%s1857_s12 + $0x130] sm:$0xff] %vm327_vm0, %v709_v48  ;;  %v767_v4 = vsub.f32 %v744_v27, %v757_v55  ;;  %v748_v7 = vmul.f32 %v1310_v59, %v746_v40  ;;  %1513 = vpow2.f32 %v761_v63  ;;  %v785_v9 = vadd.f32 %v757_v55, %v744_v27 }
  0x72   : > { %1298 = vst.msk [vmem:[%s1857_s12 + $0x118] sm:$0xff] %vm327_vm0, %v692_v60  ;;  %v756_v6 = vmul.f32 %v1510_v2, %v2050_v49  ;;  %v810_v12 = vstv %s2081_s21  ;;  %v2121_v62 = vstv %s2075_s14  ;;  %v840_v14 = vmul.f32 1.442695, %v1331_v0  ;;  %s2208_s14 = sld [smem:[#allocation5 + $0x20]] }
  0x73   : > { %1302 = vst.msk [vmem:[%s1857_s12 + $0x138] sm:$0xff] %vm327_vm0, %v710_v3  ;;  %v769_v11 = vmax.f32 %v767_v4, 0.0  ;;  %v787_v17 = vmax.f32 %v785_v9, 0.0  ;;  %v811_v13 = vadd.f32 %v810_v12, %v1781_v1  ;;  %v831_v20 = vmul.f32 %v1327_v10, %v2121_v62  ;;  %s2226_s21 = sld [smem:[#allocation5 + $0x21]] }
  0x74   : > { %v758_v16 = vmul.f32 0.5, %v756_v6  ;;  %1515 = vpow2.f32 %v840_v14  ;;  %v812_v23 = vadd.f32 %v810_v12, %v1795_v8  ;;  %v832_v27 = vmul.f32 %v1328_v15, %v2121_v62 }
  0x75   : > { %v771_v49 = vmin.f32 %v1819_v25, %v769_v11  ;;  %v789_v24 = vmin.f32 %v1819_v25, %v787_v17  ;;  %v749_v29 = vadd.f32 %v747_v58, %v727_v61  ;;  %v750_v31 = vadd.f32 %v748_v7, %v728_v5  ;;  %v1351_v5 = vld [vmem:[%s1773_s5 + $0x1e0] sm:$0xff] }
  0x76   : > { %v768_v19 = vsub.f32 %v745_v56, %v758_v16  ;;  %v786_v26 = vadd.f32 %v758_v16, %v745_v56  ;;  %v1512_v1 = vpop.eup %1511  ;;  %v842_v33 = vmul.f32 1.442695, %v1332_v18  ;;  %v815_v8 = vstv %s2097_s22  ;;  %v1347_v11 = vld [vmem:[%s1773_s5 + $0x1c0] sm:$0xff] }
  0x77   : > { %1315 = vst.msk [vmem:[%s1857_s12 + $0x140] sm:$0xff] %vm327_vm0, %v771_v49  ;;  %v1514_v34 = vpop.eup %1513  ;;  %v763_v35 = vmul.f32 %v1512_v1, %v746_v40  ;;  %v2143_v39 = vstv %s2107_s24  ;;  %v833_v42 = vadd.f32 %v831_v20, %v811_v13  ;;  %v848_v43 = vmul.f32 1.442695, %v1333_v28  ;;  %s1593_s24 = scalar_lea.hbm %s2370_s4, 1152 }
  0x78   : > { %v770_v30 = vmax.f32 %v768_v19, 0.0  ;;  %1319 = vst.msk [vmem:[%s1857_s12 + $0x160] sm:$0xff] %vm327_vm0, %v789_v24  ;;  %v788_v36 = vmax.f32 %v786_v26, 0.0  ;;  %v764_v41 = vmul.f32 %v1514_v34, %v746_v40  ;;  %1517 = vpow2.f32 %v842_v33  ;;  %v2183_v19 = vld [vmem:[%s2368_s2] sm:$0xff]  ;;  %v1352_v33 = vld [vmem:[%s1773_s5 + $0x1e8] sm:$0xff] }
  0x79   : > { %v765_v46 = vmul.f32 0.5, %v763_v35  ;;  %v2148_v50 = vadd.f32 %v832_v27, %v812_v23  ;;  %v816_v53 = vadd.f32 %v1810_v21, %v815_v8  ;;  %v836_v48 = vmul.f32 %v1329_v38, %v2143_v39 }
  0x7a   : > { %v772_v45 = vmin.f32 %v1819_v25, %v770_v30  ;;  %v790_v47 = vmin.f32 %v1819_v25, %v788_v36  ;;  %v1516_v32 = vpop.eup %1515  ;;  %v766_v52 = vmul.f32 0.5, %v764_v41  ;;  %1519 = vpow2.f32 %v848_v43  ;;  %v2200_v30 = vld [vmem:[%s2368_s2 + $0x8] sm:$0xff] }
  0x7b   : > { %v776_v40 = vsub.f32 %v749_v29, %v765_v46  ;;  %v794_v54 = vadd.f32 %v765_v46, %v749_v29  ;;  %v844_v55 = vmul.f32 %v1516_v32, %v2121_v62  ;;  %v850_v56 = vmul.f32 1.442695, %v1334_v44  ;;  %v1353_v46 = vld [vmem:[%s1773_s5 + $0x1f0] sm:$0xff] }
  0x7c   : > { %1316 = vst.msk [vmem:[%s1857_s12 + $0x148] sm:$0xff] %vm327_vm0, %v772_v45  ;;  %v777_v57 = vsub.f32 %v750_v31, %v766_v52  ;;  %v795_v59 = vadd.f32 %v766_v52, %v750_v31  ;;  %v817_v60 = vadd.f32 %v1816_v22, %v815_v8  ;;  %v837_v21 = vmul.f32 %v1330_v51, %v2143_v39 }
  0x7d   : > { %1320 = vst.msk [vmem:[%s1857_s12 + $0x168] sm:$0xff] %vm327_vm0, %v790_v47  ;;  %v778_v61 = vmax.f32 %v776_v40, 0.0  ;;  %v796_v58 = vmax.f32 %v794_v54, 0.0  ;;  %v846_v63 = vmul.f32 0.5, %v844_v55  ;;  %1521 = vpow2.f32 %v850_v56  ;;  %v1354_v55 = vld [vmem:[%s1773_s5 + $0x1f8] sm:$0xff] }
  0x7e   : > { %v1518_v0 = vpop.eup %1517  ;;  %v779_v2 = vmax.f32 %v777_v57, 0.0  ;;  %v797_v3 = vmax.f32 %v795_v59, 0.0  ;;  %v899_v4 = vstv %s2137_s30  ;;  %v2165_v6 = vstv %s2132_s26  ;;  %s2234_s26 = sld [smem:[#allocation5 + $0x23]] }
  0x7f   : > { %v780_v22 = vmin.f32 %v1828_v37, %v778_v61  ;;  %v798_v7 = vmin.f32 %v1828_v37, %v796_v58  ;;  %v856_v9 = vsub.f32 %v833_v42, %v846_v63  ;;  %v845_v10 = vmul.f32 %v1518_v0, %v2121_v62  ;;  %v1541_v58 = vld [vmem:[%s2368_s2 + $0x10] sm:$0xff] }
  0x80   : > { %v1520_v12 = vpop.eup %1519  ;;  %v781_v14 = vmin.f32 %v1828_v37, %v779_v2  ;;  %v799_v15 = vmin.f32 %v1828_v37, %v797_v3  ;;  %v838_v16 = vadd.f32 %v836_v48, %v816_v53  ;;  %v874_v17 = vadd.f32 %v846_v63, %v833_v42  ;;  %v1348_v42 = vld [vmem:[%s1773_s5 + $0x1c8] sm:$0xff]  ;;  %v1349_v53 = vld [vmem:[%s1773_s5 + $0x1d0] sm:$0xff] }
  0x81   : > { %1317 = vst.msk [vmem:[%s1857_s12 + $0x150] sm:$0xff] %vm327_vm0, %v780_v22  ;;  %v858_v13 = vmax.f32 %v856_v9, 0.0  ;;  %v847_v18 = vmul.f32 0.5, %v845_v10  ;;  %v852_v49 = vmul.f32 %v1520_v12, %v2143_v39  ;;  %v929_v20 = vmul.f32 1.442695, %v1351_v5  ;;  %v1371_v22 = vld [vmem:[%s1773_s5 + $0x220] sm:$0xff] }
  0x82   : > { %1318 = vst.msk [vmem:[%s1857_s12 + $0x158] sm:$0xff] %vm327_vm0, %v781_v14  ;;  %v839_v62 = vadd.f32 %v837_v21, %v817_v60  ;;  %v876_v23 = vmax.f32 %v874_v17, 0.0  ;;  %v900_v24 = vadd.f32 %v2183_v19, %v899_v4  ;;  %v920_v26 = vmul.f32 %v1347_v11, %v2165_v6  ;;  %v1372_v12 = vld [vmem:[%s1773_s5 + $0x228] sm:$0xff]  ;;  %v1367_v17 = vld [vmem:[%s1773_s5 + $0x200] sm:$0xff] }
  0x83   : > { %v1522_v27 = vpop.eup %1521  ;;  %1321 = vst.msk [vmem:[%s1857_s12 + $0x170] sm:$0xff] %vm327_vm0, %v798_v7  ;;  %v860_v28 = vmin.f32 %v1819_v25, %v858_v13  ;;  %v857_v1 = vsub.f32 %v2148_v50, %v847_v18  ;;  %v854_v29 = vmul.f32 0.5, %v852_v49  ;;  %v875_v31 = vadd.f32 %v847_v18, %v2148_v50  ;;  %v1368_v18 = vld [vmem:[%s1773_s5 + $0x208] sm:$0xff] }
  0x84   : > { %1322 = vst.msk [vmem:[%s1857_s12 + $0x178] sm:$0xff] %vm327_vm0, %v799_v15  ;;  %v853_v8 = vmul.f32 %v1522_v27, %v2143_v39  ;;  %v878_v34 = vmin.f32 %v1819_v25, %v876_v23  ;;  %1523 = vpow2.f32 %v929_v20  ;;  %v901_v35 = vadd.f32 %v2200_v30, %v899_v4  ;;  %v1350_v4 = vld [vmem:[%s1773_s5 + $0x1d8] sm:$0xff] }
  0x85   : > { %1335 = vst.msk [vmem:[%s1857_s12 + $0x180] sm:$0xff] %vm327_vm0, %v860_v28  ;;  %v859_v36 = vmax.f32 %v857_v1, 0.0  ;;  %v865_v38 = vsub.f32 %v838_v16, %v854_v29  ;;  %v877_v39 = vmax.f32 %v875_v31, 0.0  ;;  %v883_v41 = vadd.f32 %v854_v29, %v838_v16  ;;  %v2250_v15 = vld [vmem:[%s2368_s2 + $0x18] sm:$0xff]  ;;  %v1373_v29 = vld [vmem:[%s1773_s5 + $0x230] sm:$0xff] }
  0x86   : > { %v855_v43 = vmul.f32 0.5, %v853_v8  ;;  %1339 = vst.msk [vmem:[%s1857_s12 + $0x1a0] sm:$0xff] %vm327_vm0, %v878_v34  ;;  %v931_v44 = vmul.f32 1.442695, %v1352_v33  ;;  %v904_v45 = vstv %s2167_s7  ;;  %v2215_v47 = vstv %s2160_s29 }
  0x87   : > { %v861_v50 = vmin.f32 %v1819_v25, %v859_v36  ;;  %v867_v51 = vmax.f32 %v865_v38, 0.0  ;;  %v879_v32 = vmin.f32 %v1819_v25, %v877_v39  ;;  %v885_v52 = vmax.f32 %v883_v41, 0.0  ;;  %v1369_v41 = vld [vmem:[%s1773_s5 + $0x210] sm:$0xff] }
  0x88   : > { %v866_v48 = vsub.f32 %v839_v62, %v855_v43  ;;  %v884_v40 = vadd.f32 %v855_v43, %v839_v62  ;;  %v921_v54 = vmul.f32 %v1348_v42, %v2165_v6  ;;  %1525 = vpow2.f32 %v931_v44 }
  0x89   : > { %1336 = vst.msk [vmem:[%s1857_s12 + $0x188] sm:$0xff] %vm327_vm0, %v861_v50  ;;  %v869_v56 = vmin.f32 %v1828_v37, %v867_v51  ;;  %v887_v57 = vmin.f32 %v1828_v37, %v885_v52  ;;  %v937_v59 = vmul.f32 1.442695, %v1353_v46  ;;  %v905_v63 = vadd.f32 %v1541_v58, %v904_v45 }
  0x8a   : > { %v1524_v60 = vpop.eup %1523  ;;  %v868_v21 = vmax.f32 %v866_v48, 0.0  ;;  %1340 = vst.msk [vmem:[%s1857_s12 + $0x1a8] sm:$0xff] %vm327_vm0, %v879_v32  ;;  %v886_v61 = vmax.f32 %v884_v40, 0.0  ;;  %v925_v0 = vmul.f32 %v1349_v53, %v2215_v47  ;;  %v922_v2 = vadd.f32 %v920_v26, %v900_v24 }
  0x8b   : > { %1337 = vst.msk [vmem:[%s1857_s12 + $0x190] sm:$0xff] %vm327_vm0, %v869_v56  ;;  %v933_v3 = vmul.f32 %v1524_v60, %v2165_v6  ;;  %1527 = vpow2.f32 %v937_v59  ;;  %v939_v5 = vmul.f32 1.442695, %v1354_v55  ;;  %v923_v10 = vadd.f32 %v921_v54, %v901_v35  ;;  %v1374_v60 = vld [vmem:[%s1773_s5 + $0x238] sm:$0xff] }
  0x8c   : > { %v870_v7 = vmin.f32 %v1828_v37, %v868_v21  ;;  %1341 = vst.msk [vmem:[%s1857_s12 + $0x1b0] sm:$0xff] %vm327_vm0, %v887_v57  ;;  %v888_v9 = vmin.f32 %v1828_v37, %v886_v61  ;;  %v988_v11 = vstv %s2203_s13  ;;  %v906_v16 = vadd.f32 %v2250_v15, %v904_v45 }
  0x8d   : > { %v935_v14 = vmul.f32 0.5, %v933_v3  ;;  %1529 = vpow2.f32 %v939_v5  ;;  %v1008_v13 = vstv %s2208_s14  ;;  %v927_v20 = vadd.f32 %v925_v0, %v905_v63 }
  0x8e   : > { %v1526_v49 = vpop.eup %1525  ;;  %1338 = vst.msk [vmem:[%s1857_s12 + $0x198] sm:$0xff] %vm327_vm0, %v870_v7  ;;  %v926_v62 = vmul.f32 %v1350_v4, %v2215_v47  ;;  %v989_v23 = vadd.f32 %v2183_v19, %v988_v11  ;;  %v1018_v24 = vmul.f32 1.442695, %v1371_v22  ;;  %v1020_v1 = vmul.f32 1.442695, %v1372_v12 }
  0x8f   : > { %1342 = vst.msk [vmem:[%s1857_s12 + $0x1b8] sm:$0xff] %vm327_vm0, %v888_v9  ;;  %v945_v26 = vsub.f32 %v922_v2, %v935_v14  ;;  %v934_v27 = vmul.f32 %v1526_v49, %v2165_v6  ;;  %v963_v28 = vadd.f32 %v935_v14, %v922_v2  ;;  %v1009_v31 = vmul.f32 %v1367_v17, %v1008_v13 }
  0x90   : > { %1531 = vpow2.f32 %v1018_v24  ;;  %v990_v33 = vadd.f32 %v2200_v30, %v988_v11  ;;  %v1010_v8 = vmul.f32 %v1368_v18, %v1008_v13  ;;  %v993_v39 = vstv %s2234_s26 }
  0x91   : > { %v1528_v34 = vpop.eup %1527  ;;  %v947_v35 = vmax.f32 %v945_v26, 0.0  ;;  %v936_v19 = vmul.f32 0.5, %v934_v27  ;;  %v965_v36 = vmax.f32 %v963_v28, 0.0  ;;  %1533 = vpow2.f32 %v1020_v1 }
  0x92   : > { %v941_v38 = vmul.f32 %v1528_v34, %v2215_v47  ;;  %v2269_v6 = vstv %s2226_s21  ;;  %v1026_v42 = vmul.f32 1.442695, %v1373_v29  ;;  %v928_v51 = vadd.f32 %v926_v62, %v906_v16 }
  0x93   : > { %v1530_v43 = vpop.eup %1529  ;;  %v949_v44 = vmin.f32 %v1819_v25, %v947_v35  ;;  %v946_v45 = vsub.f32 %v923_v10, %v936_v19  ;;  %v967_v30 = vmin.f32 %v1819_v25, %v965_v36  ;;  %v964_v46 = vadd.f32 %v936_v19, %v923_v10 }
  0x94   : > { %v943_v50 = vmul.f32 0.5, %v941_v38  ;;  %v942_v32 = vmul.f32 %v1530_v43, %v2215_v47  ;;  %1535 = vpow2.f32 %v1026_v42  ;;  %v994_v48 = vadd.f32 %v1541_v58, %v993_v39 }
  0x95   : > { %1355 = vst.msk [vmem:[%s1857_s12 + $0x1c0] sm:$0xff] %vm327_vm0, %v949_v44  ;;  %v948_v52 = vmax.f32 %v946_v45, 0.0  ;;  %v966_v53 = vmax.f32 %v964_v46, 0.0  ;;  %v1014_v40 = vmul.f32 %v1369_v41, %v2269_v6  ;;  %v1011_v59 = vadd.f32 %v1009_v31, %v989_v23 }
  0x96   : > { %v1532_v54 = vpop.eup %1531  ;;  %v954_v55 = vsub.f32 %v927_v20, %v943_v50  ;;  %v944_v56 = vmul.f32 0.5, %v942_v32  ;;  %1359 = vst.msk [vmem:[%s1857_s12 + $0x1e0] sm:$0xff] %vm327_vm0, %v967_v30  ;;  %v972_v57 = vadd.f32 %v943_v50, %v927_v20  ;;  %v1012_v0 = vadd.f32 %v1010_v8, %v990_v33  ;;  %v1370_v20 = vld [vmem:[%s1773_s5 + $0x218] sm:$0xff]  ;;  %s1388_s5 = smul.u32 576, %s1651_s18 }
  0x97   : > { %v1534_v21 = vpop.eup %1533  ;;  %v950_v47 = vmin.f32 %v1819_v25, %v948_v52  ;;  %v968_v61 = vmin.f32 %v1819_v25, %v966_v53  ;;  %v1022_v63 = vmul.f32 %v1532_v54, %v1008_v13  ;;  %v1016_v7 = vadd.f32 %v1014_v40, %v994_v48 }
  0x98   : > { %v956_v58 = vmax.f32 %v954_v55, 0.0  ;;  %v955_v2 = vsub.f32 %v928_v51, %v944_v56  ;;  %v974_v3 = vmax.f32 %v972_v57, 0.0  ;;  %v973_v4 = vadd.f32 %v944_v56, %v928_v51  ;;  %s1085_s8 = scalar_lea.hbm %s2370_s4, %s1388_s5 }
  0x99   : > { %1356 = vst.msk [vmem:[%s1857_s12 + $0x1c8] sm:$0xff] %vm327_vm0, %v950_v47  ;;  %v1024_v5 = vmul.f32 0.5, %v1022_v63  ;;  %v1023_v22 = vmul.f32 %v1534_v21, %v1008_v13  ;;  %v1028_v9 = vmul.f32 1.442695, %v1374_v60  ;;  %v995_v1 = vadd.f32 %v2250_v15, %v993_v39  ;;  %s1088_s10 = sshll.u32 %s1085_s8, 4  ;;  %s1089_s10 = int_to_ptr.hbm [resolvable:$true] %s1088_s10 }
  0x9a   : > { %v1536_v10 = vpop.eup %1535  ;;  %v958_v11 = vmin.f32 %v1828_v37, %v956_v58  ;;  %v957_v12 = vmax.f32 %v955_v2, 0.0  ;;  %1360 = vst.msk [vmem:[%s1857_s12 + $0x1e8] sm:$0xff] %vm327_vm0, %v968_v61  ;;  %v976_v14 = vmin.f32 %v1828_v37, %v974_v3  ;;  %v975_v16 = vmax.f32 %v973_v4, 0.0  ;;  %s1587_s13 = sshra.s32 %s1089_s10, 4  ;;  %s1588_s13 = int_to_ptr.hbm [resolvable:$true] %s1587_s13 }
  0x9b   : > { %v1034_v17 = vsub.f32 %v1011_v59, %v1024_v5  ;;  %v1025_v18 = vmul.f32 0.5, %v1023_v22  ;;  %v1030_v49 = vmul.f32 %v1536_v10, %v2269_v6  ;;  %1537 = vpow2.f32 %v1028_v9  ;;  %s1589_s14 = scalar_lea.hbm %s1588_s13, 576  ;;  %p1594_p5 = scmp.lt.s32.totalorder %s1588_s13, %s2370_s4 }
  0x9c   : > { %1357 = vst.msk [vmem:[%s1857_s12 + $0x1d0] sm:$0xff] %vm327_vm0, %v958_v11  ;;  %v959_v13 = vmin.f32 %v1828_v37, %v957_v12  ;;  %v977_v62 = vmin.f32 %v1828_v37, %v975_v16  ;;  %v1052_v23 = vadd.f32 %v1024_v5, %v1011_v59  ;;  %v1015_v29 = vmul.f32 %v1370_v20, %v2269_v6  ;;  %p1590_p1 = scmp.ne.s32.totalorder %s1588_s13, %s1589_s14  ;;  %p1595_p6 = scmp.lt.s32.totalorder %s1593_s24, %s1589_s14 }
  0x9d   : > { %1361 = vst.msk [vmem:[%s1857_s12 + $0x1f0] sm:$0xff] %vm327_vm0, %v976_v14  ;;  %v1036_v24 = vmax.f32 %v1034_v17, 0.0  ;;  %v1035_v26 = vsub.f32 %v1012_v0, %v1025_v18  ;;  %v1032_v27 = vmul.f32 0.5, %v1030_v49  ;;  %v1053_v28 = vadd.f32 %v1025_v18, %v1012_v0 }
  0x9e   : > { %1358 = vst.msk [vmem:[%s1857_s12 + $0x1d8] sm:$0xff] %vm327_vm0, %v959_v13  ;;  %v1054_v31 = vmax.f32 %v1052_v23, 0.0  ;;  %v1017_v42 = vadd.f32 %v1015_v29, %v995_v1  ;;  %p1591_p2 = pnand %p1590_p1, %p1730_p4  ;;  %p1596_p7 = por %p1595_p6, %p1594_p5 }
  0x9f   : > { %1362 = vst.msk [vmem:[%s1857_s12 + $0x1f8] sm:$0xff] %vm327_vm0, %v977_v62  ;;  %v1038_v33 = vmin.f32 %v1819_v25, %v1036_v24  ;;  %v1037_v8 = vmax.f32 %v1035_v26, 0.0  ;;  %v1043_v34 = vsub.f32 %v1016_v7, %v1032_v27  ;;  %v1055_v35 = vmax.f32 %v1053_v28, 0.0 }
  0xa0   : > { %v1056_v19 = vmin.f32 %v1819_v25, %v1054_v31  ;;  %v1061_v36 = vadd.f32 %v1032_v27, %v1016_v7  ;;  %p1592_p3 = pneg %p1591_p2 }
  0xa1   : > { %v1538_v38 = vpop.eup %1537  ;;  %1375 = vst.msk [vmem:[%s1857_s12 + $0x200] sm:$0xff] %vm327_vm0, %v1038_v33  ;;  %v1039_v15 = vmin.f32 %v1819_v25, %v1037_v8  ;;  %v1045_v39 = vmax.f32 %v1043_v34, 0.0  ;;  %v1057_v41 = vmin.f32 %v1819_v25, %v1055_v35 }
  0xa2   : > { %v1031_v43 = vmul.f32 %v1538_v38, %v2269_v6  ;;  %1379 = vst.msk [vmem:[%s1857_s12 + $0x220] sm:$0xff] %vm327_vm0, %v1056_v19  ;;  %v1063_v44 = vmax.f32 %v1061_v36, 0.0  ;;  %p1597_p9 = pnand %p1596_p7, %p1592_p3 }
  0xa3   : > { %1376 = vst.msk [vmem:[%s1857_s12 + $0x208] sm:$0xff] %vm327_vm0, %v1039_v15  ;;  %v1047_v45 = vmin.f32 %v1828_v37, %v1045_v39 }
  0xa4   : > { %v1033_v30 = vmul.f32 0.5, %v1031_v43  ;;  %1380 = vst.msk [vmem:[%s1857_s12 + $0x228] sm:$0xff] %vm327_vm0, %v1057_v41  ;;  %v1065_v46 = vmin.f32 %v1828_v37, %v1063_v44 }
  0xa5   : > { %1377 = vst.msk [vmem:[%s1857_s12 + $0x210] sm:$0xff] %vm327_vm0, %v1047_v45 }
  0xa6   : > { %v1044_v25 = vsub.f32 %v1017_v42, %v1033_v30  ;;  %1381 = vst.msk [vmem:[%s1857_s12 + $0x230] sm:$0xff] %vm327_vm0, %v1065_v46  ;;  %v1062_v6 = vadd.f32 %v1033_v30, %v1017_v42 }
  0xa8   : > { %v1046_v50 = vmax.f32 %v1044_v25, 0.0  ;;  %v1064_v51 = vmax.f32 %v1062_v6, 0.0 }
  0xaa   : > { %v1048_v32 = vmin.f32 %v1828_v37, %v1046_v50  ;;  %v1066_v52 = vmin.f32 %v1828_v37, %v1064_v51 }
  0xac   : > { %1378 = vst.msk [vmem:[%s1857_s12 + $0x218] sm:$0xff] %vm327_vm0, %v1048_v32 }
  0xad   : > { %1382 = vst.msk [vmem:[%s1857_s12 + $0x238] sm:$0xff] %vm327_vm0, %v1066_v52 }
  0xae   : > { %1600 = shalt.err (!%p1597_p9)
}
  0xaf   : > { %s1663_s6 = smov 128   ;;  %s1664_s12 = smov 8  }
  0xb0   : > { %1397 = dma.vmem_to_hbm [thread:$0]  (%p1730_p4), %s1087_s9, 9216, %s1089_s10, %s1071_s11, %s1663_s6, %s1663_s6, %s1664_s12  }
  0xb1 PF: > { %p1414_p10 = scmp.ge.s32.totalorder %s1659_s20, 2  ;;  %s1103_s29 = sand.u32 1, %s1639_s15  }
  0xb2   : > { %s1104_s5 = scalar_lea.sflag [#allocation3], %s1103_s29 }
  0xb3   : > { %p1407_p11 = pnand %p1414_p10, %p1737_p8 }
  0xb5   : > { %p1408_p12 = pneg %p1407_p11 }
  0xb7   : > { %1634 = dma.done.wait (%p1408_p12), %s1104_s5, 9216  }
  0xb8   : > { %1636 = vsyncadd (%p1408_p12), %s1104_s5, 4294958080  ;;  %s19_s20 = sadd.s32 1, %s1659_s20   ;;  %s2374_s15 = smov %s1643_s16 }
  0xb9   : > { %p16_p13 = scmp.ge.s32.totalorder %s19_s20, 4   ;;  %s2375_s16 = smov %s1647_s17 }
  0xba   : > { %s2376_s17 = smov %s1743_s28  ;;  %s2377_s18 = smov %s1655_s19 }
  0xbb   : > { %s2378_s19 = smov %s2380_s23  ;;  %18 = sbr.rel (!%p16_p13) target bundleno = 6 (0x6), region = 151 }
  0xc0   :  { %1110 = vsyncpa [#allocation3], 1 }
  0xc1   :  { %1112 = vsyncpa [#allocation3 + $0x1], 1 }
  0xc2   :  { %1113 = vsyncpa [#allocation4], 1 }
  0xc3   :  { %1115 = vsyncpa [#allocation4 + $0x1], 1 }
  0xc4   :  { %1116 = vsyncpa [#allocation6], 1 }

</bundles_post_ra>
